<compile_context>
chip_gen: v5e
topology: v5e:2x2
jax: 0.10.0
libtpu: 0.0.40
codegen_flags: <defaults>
</compile_context>

<pallas_src>
import functools

import jax
import jax.numpy as jnp
import numpy as np
from jax.experimental import pallas as pl
from jax.experimental.pallas import tpu as pltpu


def sisdr_loss_kernel(*refs, n_t, w1, w2, w3, gamma, is_train):
    if is_train:
        (s1_ref, s2_ref, s3_ref, tgt_ref, logits_ref, sid_ref,
         out_ref, mom_ref) = refs
    else:
        s1_ref, s2_ref, s3_ref, tgt_ref, out_ref, mom_ref = refs
        logits_ref = sid_ref = None

    k = pl.program_id(1)

    @pl.when(k == 0)
    def _():
        mom_ref[...] = jnp.zeros_like(mom_ref)

    # ---- streaming moment accumulation over this time chunk ---------------
    t = tgt_ref[...].astype(jnp.float32)                 # [TB, TT]
    # target-side moments computed once, shared by the three estimates
    mom_ref[0] += jnp.sum(t, axis=-1, keepdims=True)     # sum(t)
    mom_ref[1] += jnp.sum(t * t, axis=-1, keepdims=True) # sum(t*t)
    for i, e_ref in enumerate((s1_ref, s2_ref, s3_ref)):
        e = e_ref[...].astype(jnp.float32)
        base = 2 + 3 * i
        mom_ref[base + 0] += jnp.sum(e, axis=-1, keepdims=True)      # sum(e)
        mom_ref[base + 1] += jnp.sum(t * e, axis=-1, keepdims=True)  # sum(t*e)
        mom_ref[base + 2] += jnp.sum(e * e, axis=-1, keepdims=True)  # sum(e*e)

    # ---- finalize on the last time chunk -----------------------------------
    @pl.when(k == pl.num_programs(1) - 1)
    def _():
        inv_n = 1.0 / float(n_t)
        st = mom_ref[0]                                   # [TB, 1]
        stt = mom_ref[1]
        ctt = stt - st * st * inv_n                       # sum(tc*tc), tc = t - mean(t)
        total = jnp.zeros_like(st)
        for i, w in enumerate((w1, w2, w3)):
            base = 2 + 3 * i
            se = mom_ref[base + 0]
            ste = mom_ref[base + 1]
            see = mom_ref[base + 2]
            cte = ste - st * se * inv_n                   # sum(tc*ec)
            cee = see - se * se * inv_n                   # sum(ec*ec)
            a = cte / ctt                                 # projection scale
            num = jnp.sqrt(jnp.maximum(a * a * ctt, 0.0))           # ||a*tc||
            den = jnp.sqrt(jnp.maximum(cee - a * cte, 0.0)) + 1e-6  # ||a*tc-ec||
            total = total + float(w) * (20.0 * jnp.log10(num / den + 1e-6))
        per_row = -total                                  # [TB, 1]

        if is_train:
            logits = logits_ref[...].astype(jnp.float32)  # [TB, C]
            sid = sid_ref[...]                            # [TB, 1] int32
            m = jnp.max(logits, axis=-1, keepdims=True)
            lse = m + jnp.log(jnp.sum(jnp.exp(logits - m), axis=-1,
                                      keepdims=True))
            cls = jax.lax.broadcasted_iota(jnp.int32, logits.shape, 1)
            picked = jnp.sum(jnp.where(cls == sid, logits, 0.0),
                             axis=-1, keepdims=True)
            per_row = per_row + float(gamma) * (lse - picked)

        out_ref[...] = per_row.astype(out_ref.dtype)


def _squeeze1(x):
    x = jnp.asarray(x)
    return x[:, 0, :] if x.ndim == 3 else x


def _as_float(x):
    x = jnp.asarray(x)
    # keep bf16 inputs as bf16 through the DMA (halves HBM traffic); the kernel
    # upcasts to f32 for the accumulation.
    if not jnp.issubdtype(x.dtype, jnp.floating):
        x = x.astype(jnp.float32)
    return x


def sisdr_loss(batch, *, alpha, beta, gamma, is_train=True):
    """Pallas implementation of SISDRLoss.forward. Returns a scalar f32."""
    s1 = _as_float(_squeeze1(batch['source_1']))
    s2 = _as_float(_squeeze1(batch['source_2']))
    s3 = _as_float(_squeeze1(batch['source_3']))
    tgt = _as_float(_squeeze1(batch['audio_target']))

    B, T = s1.shape

    # ---- tiling -------------------------------------------------------------
    # Time chunk: 4096 lanes per step (well past the ~512-lane HBM-roofline
    # knee) while keeping 4 signals x 2 pipeline buffers at ~1 MiB of VMEM,
    # far below v7x's 64 MiB physical / 32 MiB default scoped limit.
    CHUNK = 4096
    if T > CHUNK:
        TT = CHUNK
    else:
        TT = ((T + 127) // 128) * 128                    # single, lane-aligned chunk
    t_pad = (-T) % TT
    if t_pad:
        pad = lambda x: jnp.pad(x, ((0, 0), (0, t_pad)))  # zeros: moment-neutral
        s1, s2, s3, tgt = pad(s1), pad(s2), pad(s3), pad(tgt)
    Tp = T + t_pad

    TB = 8 if B % 8 == 0 else B                          # batch tile (sublanes)

    sig_spec = pl.BlockSpec((TB, TT), lambda b, k: (b, k))
    in_specs = [sig_spec, sig_spec, sig_spec, sig_spec]
    inputs = [s1, s2, s3, tgt]
    if is_train:
        logits = _as_float(jnp.asarray(batch['logits']))
        C = logits.shape[-1]
        sid = jnp.asarray(batch['speaker_id']).astype(jnp.int32).reshape(B, 1)
        # logits / ids blocks are constant across the time axis -> fetched once
        # per batch tile; no materialized one-hot is DMA'd.
        in_specs += [pl.BlockSpec((TB, C), lambda b, k: (b, 0)),
                     pl.BlockSpec((TB, 1), lambda b, k: (b, 0))]
        inputs += [logits, sid]

    kernel = functools.partial(
        sisdr_loss_kernel, n_t=T, w1=(1.0 - alpha - beta), w2=alpha, w3=beta,
        gamma=gamma, is_train=is_train)

    per_row = pl.pallas_call(
        kernel,
        out_shape=jax.ShapeDtypeStruct((B, 1), jnp.float32),
        grid_spec=pltpu.PrefetchScalarGridSpec(
            num_scalar_prefetch=0,
            grid=(B // TB, Tp // TT),            # reduction (time) axis last
            in_specs=in_specs,
            out_specs=pl.BlockSpec((TB, 1), lambda b, k: (b, 0)),
            scratch_shapes=[pltpu.VMEM((11, TB, 1), jnp.float32)]),
        compiler_params=pltpu.CompilerParams(
            dimension_semantics=("parallel", "arbitrary")),
    )(*inputs)

    # trivial batch mean of exact per-row partials (per review suggestion)
    return jnp.mean(per_row)


# ---------------- pure-JAX reference for validation ----------------
def _ref_compute(est, target):
    if est.ndim == 3:
        est = est[:, 0, :]
    if target.ndim == 3:
        target = target[:, 0, :]
    target = target - jnp.mean(target, axis=-1, keepdims=True)
    est = est - jnp.mean(est, axis=-1, keepdims=True)
    a = (jnp.sum(target * est, -1, keepdims=True) /
         jnp.linalg.norm(target, axis=-1, keepdims=True) ** 2)
    return 20 * jnp.log10(jnp.linalg.norm(a * target, axis=-1) /
                          (jnp.linalg.norm(a * target - est, axis=-1) + 1e-6) + 1e-6)


def _ref_loss(batch, alpha, beta, gamma, is_train=True):
    s1 = (1 - alpha - beta) * _ref_compute(batch['source_1'], batch['audio_target'])
    s2 = alpha * _ref_compute(batch['source_2'], batch['audio_target'])
    s3 = beta * _ref_compute(batch['source_3'], batch['audio_target'])
    l_sisdr = -(s1 + s2 + s3)
    if is_train:
        logits = batch['logits']
        logp = jax.nn.log_softmax(logits, axis=-1)
        ce = -jnp.mean(jnp.take_along_axis(
            logp, batch['speaker_id'][:, None].astype(jnp.int32), axis=-1))
        return l_sisdr.mean() + gamma * ce
    return l_sisdr.mean()


if __name__ == "__main__":
    key = jax.random.PRNGKey(0)
    # small but realistic: 1 s of 16 kHz audio -> exercises multi-chunk
    # streaming AND the zero-padding path (16000 -> 16384 = 4 chunks of 4096).
    B, T, C = 8, 16000, 16
    ks = jax.random.split(key, 6)
    batch = {
        'source_1': jax.random.normal(ks[0], (B, 1, T), jnp.float32),
        'source_2': jax.random.normal(ks[1], (B, 1, T), jnp.float32),
        'source_3': jax.random.normal(ks[2], (B, 1, T), jnp.float32),
        'audio_target': jax.random.normal(ks[3], (B, 1, T), jnp.float32),
        'logits': jax.random.normal(ks[4], (B, C), jnp.float32),
        'speaker_id': jax.random.randint(ks[5], (B,), 0, C, jnp.int32),
    }
    alpha, beta, gamma = 0.1, 0.1, 0.5

    # train path (SI-SDR + gamma * CrossEntropy)
    loss = sisdr_loss(batch, alpha=alpha, beta=beta, gamma=gamma, is_train=True)
    loss = jax.block_until_ready(loss)
    ref = _ref_loss(batch, alpha, beta, gamma, is_train=True)
    np.testing.assert_allclose(np.asarray(loss), np.asarray(ref),
                               rtol=5e-4, atol=5e-4)

    # eval path (no cross-entropy term, logits/speaker_id never DMA'd)
    loss_eval = sisdr_loss(batch, alpha=alpha, beta=beta, gamma=gamma,
                           is_train=False)
    loss_eval = jax.block_until_ready(loss_eval)
    ref_eval = _ref_loss(batch, alpha, beta, gamma, is_train=False)
    np.testing.assert_allclose(np.asarray(loss_eval), np.asarray(ref_eval),
                               rtol=5e-4, atol=5e-4)

    print("KERNEL_OK")
</pallas_src>

<mosaic_0001>
module attributes {stable_mosaic.version = 11 : i64} {
  func.func @sisdr_loss_kernel(%arg0: i32, %arg1: i32, %arg2: memref<8x4096xf32, #tpu.memory_space<vmem>>, %arg3: memref<8x4096xf32, #tpu.memory_space<vmem>>, %arg4: memref<8x4096xf32, #tpu.memory_space<vmem>>, %arg5: memref<8x4096xf32, #tpu.memory_space<vmem>>, %arg6: memref<8x16xf32, #tpu.memory_space<vmem>>, %arg7: memref<8x1xi32, #tpu.memory_space<vmem>>, %arg8: memref<8x1xf32, #tpu.memory_space<vmem>>, %arg9: memref<11x8x1xf32, #tpu.memory_space<vmem>>) attributes {dimension_semantics = [#tpu.dimension_semantics<parallel>, #tpu.dimension_semantics<arbitrary>], iteration_bounds = array<i64: 1, 4>, scalar_prefetch = 0 : i64, scratch_operands = 1 : i64, tpu.core_type = #tpu.core_type<tc>, window_params = [{transform_indices = @transform_0, window_bounds = array<i64: 8, 4096>}, {transform_indices = @transform_1, window_bounds = array<i64: 8, 4096>}, {transform_indices = @transform_2, window_bounds = array<i64: 8, 4096>}, {transform_indices = @transform_3, window_bounds = array<i64: 8, 4096>}, {transform_indices = @transform_4, window_bounds = array<i64: 8, 16>}, {transform_indices = @transform_5, window_bounds = array<i64: 8, 1>}, {transform_indices = @transform_6, window_bounds = array<i64: 8, 1>}]} {
    %c0_i32 = arith.constant 0 : i32
    %0 = arith.cmpi eq, %arg1, %c0_i32 : i32
    %1 = arith.extui %0 : i1 to i32
    %c0_i32_0 = arith.constant 0 : i32
    %2 = arith.cmpi ne, %1, %c0_i32_0 : i32
    scf.if %2 {
      %cst_75 = arith.constant 0.000000e+00 : f32
      %105 = vector.broadcast %cst_75 : f32 to vector<11x8x1xf32>
      %c0_76 = arith.constant 0 : index
      %c0_77 = arith.constant 0 : index
      %c0_78 = arith.constant 0 : index
      %106 = vector.load %arg9[%c0_76, %c0_77, %c0_78] : memref<11x8x1xf32, #tpu.memory_space<vmem>>, vector<11x8x1xf32>
      tpu.vector_store %arg9[%c0_76, %c0_77, %c0_78], %105 {strides = array<i32>} : memref<11x8x1xf32, #tpu.memory_space<vmem>>, vector<11x8x1xf32>,
    } else {
    }
    %c0 = arith.constant 0 : index
    %c0_1 = arith.constant 0 : index
    %3 = vector.load %arg5[%c0, %c0_1] : memref<8x4096xf32, #tpu.memory_space<vmem>>, vector<8x4096xf32>
    %c0_2 = arith.constant 0 : index
    %c0_3 = arith.constant 0 : index
    %c0_4 = arith.constant 0 : index
    %4 = vector.load %arg9[%c0_2, %c0_3, %c0_4] : memref<11x8x1xf32, #tpu.memory_space<vmem>>, vector<1x8x1xf32>
    %5 = vector.shape_cast %4 : vector<1x8x1xf32> to vector<8x1xf32>
    %cst = arith.constant dense<0.000000e+00> : vector<8xf32>
    %6 = vector.multi_reduction <add>, %3, %cst [1] : vector<8x4096xf32> to vector<8xf32>
    %7 = vector.shape_cast %6 : vector<8xf32> to vector<8x1xf32>
    %8 = arith.addf %5, %7 : vector<8x1xf32>
    %c0_5 = arith.constant 0 : index
    %c0_6 = arith.constant 0 : index
    %c0_7 = arith.constant 0 : index
    %9 = vector.load %arg9[%c0_5, %c0_6, %c0_7] : memref<11x8x1xf32, #tpu.memory_space<vmem>>, vector<1x8x1xf32>
    %10 = vector.shape_cast %9 : vector<1x8x1xf32> to vector<8x1xf32>
    %11 = vector.shape_cast %8 : vector<8x1xf32> to vector<1x8x1xf32>
    tpu.vector_store %arg9[%c0_5, %c0_6, %c0_7], %11 {strides = array<i32>} : memref<11x8x1xf32, #tpu.memory_space<vmem>>, vector<1x8x1xf32>,
    %c1 = arith.constant 1 : index
    %c0_8 = arith.constant 0 : index
    %c0_9 = arith.constant 0 : index
    %12 = vector.load %arg9[%c1, %c0_8, %c0_9] : memref<11x8x1xf32, #tpu.memory_space<vmem>>, vector<1x8x1xf32>
    %13 = vector.shape_cast %12 : vector<1x8x1xf32> to vector<8x1xf32>
    %14 = arith.mulf %3, %3 : vector<8x4096xf32>
    %cst_10 = arith.constant dense<0.000000e+00> : vector<8xf32>
    %15 = vector.multi_reduction <add>, %14, %cst_10 [1] : vector<8x4096xf32> to vector<8xf32>
    %16 = vector.shape_cast %15 : vector<8xf32> to vector<8x1xf32>
    %17 = arith.addf %13, %16 : vector<8x1xf32>
    %c1_11 = arith.constant 1 : index
    %c0_12 = arith.constant 0 : index
    %c0_13 = arith.constant 0 : index
    %18 = vector.load %arg9[%c1_11, %c0_12, %c0_13] : memref<11x8x1xf32, #tpu.memory_space<vmem>>, vector<1x8x1xf32>
    %19 = vector.shape_cast %18 : vector<1x8x1xf32> to vector<8x1xf32>
    %20 = vector.shape_cast %17 : vector<8x1xf32> to vector<1x8x1xf32>
    tpu.vector_store %arg9[%c1_11, %c0_12, %c0_13], %20 {strides = array<i32>} : memref<11x8x1xf32, #tpu.memory_space<vmem>>, vector<1x8x1xf32>,
    %c0_14 = arith.constant 0 : index
    %c0_15 = arith.constant 0 : index
    %21 = vector.load %arg2[%c0_14, %c0_15] : memref<8x4096xf32, #tpu.memory_space<vmem>>, vector<8x4096xf32>
    %c2 = arith.constant 2 : index
    %c0_16 = arith.constant 0 : index
    %c0_17 = arith.constant 0 : index
    %22 = vector.load %arg9[%c2, %c0_16, %c0_17] : memref<11x8x1xf32, #tpu.memory_space<vmem>>, vector<1x8x1xf32>
    %23 = vector.shape_cast %22 : vector<1x8x1xf32> to vector<8x1xf32>
    %cst_18 = arith.constant dense<0.000000e+00> : vector<8xf32>
    %24 = vector.multi_reduction <add>, %21, %cst_18 [1] : vector<8x4096xf32> to vector<8xf32>
    %25 = vector.shape_cast %24 : vector<8xf32> to vector<8x1xf32>
    %26 = arith.addf %23, %25 : vector<8x1xf32>
    %c2_19 = arith.constant 2 : index
    %c0_20 = arith.constant 0 : index
    %c0_21 = arith.constant 0 : index
    %27 = vector.load %arg9[%c2_19, %c0_20, %c0_21] : memref<11x8x1xf32, #tpu.memory_space<vmem>>, vector<1x8x1xf32>
    %28 = vector.shape_cast %27 : vector<1x8x1xf32> to vector<8x1xf32>
    %29 = vector.shape_cast %26 : vector<8x1xf32> to vector<1x8x1xf32>
    tpu.vector_store %arg9[%c2_19, %c0_20, %c0_21], %29 {strides = array<i32>} : memref<11x8x1xf32, #tpu.memory_space<vmem>>, vector<1x8x1xf32>,
    %c3 = arith.constant 3 : index
    %c0_22 = arith.constant 0 : index
    %c0_23 = arith.constant 0 : index
    %30 = vector.load %arg9[%c3, %c0_22, %c0_23] : memref<11x8x1xf32, #tpu.memory_space<vmem>>, vector<1x8x1xf32>
    %31 = vector.shape_cast %30 : vector<1x8x1xf32> to vector<8x1xf32>
    %32 = arith.mulf %3, %21 : vector<8x4096xf32>
    %cst_24 = arith.constant dense<0.000000e+00> : vector<8xf32>
    %33 = vector.multi_reduction <add>, %32, %cst_24 [1] : vector<8x4096xf32> to vector<8xf32>
    %34 = vector.shape_cast %33 : vector<8xf32> to vector<8x1xf32>
    %35 = arith.addf %31, %34 : vector<8x1xf32>
    %c3_25 = arith.constant 3 : index
    %c0_26 = arith.constant 0 : index
    %c0_27 = arith.constant 0 : index
    %36 = vector.load %arg9[%c3_25, %c0_26, %c0_27] : memref<11x8x1xf32, #tpu.memory_space<vmem>>, vector<1x8x1xf32>
    %37 = vector.shape_cast %36 : vector<1x8x1xf32> to vector<8x1xf32>
    %38 = vector.shape_cast %35 : vector<8x1xf32> to vector<1x8x1xf32>
    tpu.vector_store %arg9[%c3_25, %c0_26, %c0_27], %38 {strides = array<i32>} : memref<11x8x1xf32, #tpu.memory_space<vmem>>, vector<1x8x1xf32>,
    %c4 = arith.constant 4 : index
    %c0_28 = arith.constant 0 : index
    %c0_29 = arith.constant 0 : index
    %39 = vector.load %arg9[%c4, %c0_28, %c0_29] : memref<11x8x1xf32, #tpu.memory_space<vmem>>, vector<1x8x1xf32>
    %40 = vector.shape_cast %39 : vector<1x8x1xf32> to vector<8x1xf32>
    %41 = arith.mulf %21, %21 : vector<8x4096xf32>
    %cst_30 = arith.constant dense<0.000000e+00> : vector<8xf32>
    %42 = vector.multi_reduction <add>, %41, %cst_30 [1] : vector<8x4096xf32> to vector<8xf32>
    %43 = vector.shape_cast %42 : vector<8xf32> to vector<8x1xf32>
    %44 = arith.addf %40, %43 : vector<8x1xf32>
    %c4_31 = arith.constant 4 : index
    %c0_32 = arith.constant 0 : index
    %c0_33 = arith.constant 0 : index
    %45 = vector.load %arg9[%c4_31, %c0_32, %c0_33] : memref<11x8x1xf32, #tpu.memory_space<vmem>>, vector<1x8x1xf32>
    %46 = vector.shape_cast %45 : vector<1x8x1xf32> to vector<8x1xf32>
    %47 = vector.shape_cast %44 : vector<8x1xf32> to vector<1x8x1xf32>
    tpu.vector_store %arg9[%c4_31, %c0_32, %c0_33], %47 {strides = array<i32>} : memref<11x8x1xf32, #tpu.memory_space<vmem>>, vector<1x8x1xf32>,
    %c0_34 = arith.constant 0 : index
    %c0_35 = arith.constant 0 : index
    %48 = vector.load %arg3[%c0_34, %c0_35] : memref<8x4096xf32, #tpu.memory_space<vmem>>, vector<8x4096xf32>
    %c5 = arith.constant 5 : index
    %c0_36 = arith.constant 0 : index
    %c0_37 = arith.constant 0 : index
    %49 = vector.load %arg9[%c5, %c0_36, %c0_37] : memref<11x8x1xf32, #tpu.memory_space<vmem>>, vector<1x8x1xf32>
    %50 = vector.shape_cast %49 : vector<1x8x1xf32> to vector<8x1xf32>
    %cst_38 = arith.constant dense<0.000000e+00> : vector<8xf32>
    %51 = vector.multi_reduction <add>, %48, %cst_38 [1] : vector<8x4096xf32> to vector<8xf32>
    %52 = vector.shape_cast %51 : vector<8xf32> to vector<8x1xf32>
    %53 = arith.addf %50, %52 : vector<8x1xf32>
    %c5_39 = arith.constant 5 : index
    %c0_40 = arith.constant 0 : index
    %c0_41 = arith.constant 0 : index
    %54 = vector.load %arg9[%c5_39, %c0_40, %c0_41] : memref<11x8x1xf32, #tpu.memory_space<vmem>>, vector<1x8x1xf32>
    %55 = vector.shape_cast %54 : vector<1x8x1xf32> to vector<8x1xf32>
    %56 = vector.shape_cast %53 : vector<8x1xf32> to vector<1x8x1xf32>
    tpu.vector_store %arg9[%c5_39, %c0_40, %c0_41], %56 {strides = array<i32>} : memref<11x8x1xf32, #tpu.memory_space<vmem>>, vector<1x8x1xf32>,
    %c6 = arith.constant 6 : index
    %c0_42 = arith.constant 0 : index
    %c0_43 = arith.constant 0 : index
    %57 = vector.load %arg9[%c6, %c0_42, %c0_43] : memref<11x8x1xf32, #tpu.memory_space<vmem>>, vector<1x8x1xf32>
    %58 = vector.shape_cast %57 : vector<1x8x1xf32> to vector<8x1xf32>
    %59 = arith.mulf %3, %48 : vector<8x4096xf32>
    %cst_44 = arith.constant dense<0.000000e+00> : vector<8xf32>
    %60 = vector.multi_reduction <add>, %59, %cst_44 [1] : vector<8x4096xf32> to vector<8xf32>
    %61 = vector.shape_cast %60 : vector<8xf32> to vector<8x1xf32>
    %62 = arith.addf %58, %61 : vector<8x1xf32>
    %c6_45 = arith.constant 6 : index
    %c0_46 = arith.constant 0 : index
    %c0_47 = arith.constant 0 : index
    %63 = vector.load %arg9[%c6_45, %c0_46, %c0_47] : memref<11x8x1xf32, #tpu.memory_space<vmem>>, vector<1x8x1xf32>
    %64 = vector.shape_cast %63 : vector<1x8x1xf32> to vector<8x1xf32>
    %65 = vector.shape_cast %62 : vector<8x1xf32> to vector<1x8x1xf32>
    tpu.vector_store %arg9[%c6_45, %c0_46, %c0_47], %65 {strides = array<i32>} : memref<11x8x1xf32, #tpu.memory_space<vmem>>, vector<1x8x1xf32>,
    %c7 = arith.constant 7 : index
    %c0_48 = arith.constant 0 : index
    %c0_49 = arith.constant 0 : index
    %66 = vector.load %arg9[%c7, %c0_48, %c0_49] : memref<11x8x1xf32, #tpu.memory_space<vmem>>, vector<1x8x1xf32>
    %67 = vector.shape_cast %66 : vector<1x8x1xf32> to vector<8x1xf32>
    %68 = arith.mulf %48, %48 : vector<8x4096xf32>
    %cst_50 = arith.constant dense<0.000000e+00> : vector<8xf32>
    %69 = vector.multi_reduction <add>, %68, %cst_50 [1] : vector<8x4096xf32> to vector<8xf32>
    %70 = vector.shape_cast %69 : vector<8xf32> to vector<8x1xf32>
    %71 = arith.addf %67, %70 : vector<8x1xf32>
    %c7_51 = arith.constant 7 : index
    %c0_52 = arith.constant 0 : index
    %c0_53 = arith.constant 0 : index
    %72 = vector.load %arg9[%c7_51, %c0_52, %c0_53] : memref<11x8x1xf32, #tpu.memory_space<vmem>>, vector<1x8x1xf32>
    %73 = vector.shape_cast %72 : vector<1x8x1xf32> to vector<8x1xf32>
    %74 = vector.shape_cast %71 : vector<8x1xf32> to vector<1x8x1xf32>
    tpu.vector_store %arg9[%c7_51, %c0_52, %c0_53], %74 {strides = array<i32>} : memref<11x8x1xf32, #tpu.memory_space<vmem>>, vector<1x8x1xf32>,
    %c0_54 = arith.constant 0 : index
    %c0_55 = arith.constant 0 : index
    %75 = vector.load %arg4[%c0_54, %c0_55] : memref<8x4096xf32, #tpu.memory_space<vmem>>, vector<8x4096xf32>
    %c8 = arith.constant 8 : index
    %c0_56 = arith.constant 0 : index
    %c0_57 = arith.constant 0 : index
    %76 = vector.load %arg9[%c8, %c0_56, %c0_57] : memref<11x8x1xf32, #tpu.memory_space<vmem>>, vector<1x8x1xf32>
    %77 = vector.shape_cast %76 : vector<1x8x1xf32> to vector<8x1xf32>
    %cst_58 = arith.constant dense<0.000000e+00> : vector<8xf32>
    %78 = vector.multi_reduction <add>, %75, %cst_58 [1] : vector<8x4096xf32> to vector<8xf32>
    %79 = vector.shape_cast %78 : vector<8xf32> to vector<8x1xf32>
    %80 = arith.addf %77, %79 : vector<8x1xf32>
    %c8_59 = arith.constant 8 : index
    %c0_60 = arith.constant 0 : index
    %c0_61 = arith.constant 0 : index
    %81 = vector.load %arg9[%c8_59, %c0_60, %c0_61] : memref<11x8x1xf32, #tpu.memory_space<vmem>>, vector<1x8x1xf32>
    %82 = vector.shape_cast %81 : vector<1x8x1xf32> to vector<8x1xf32>
    %83 = vector.shape_cast %80 : vector<8x1xf32> to vector<1x8x1xf32>
    tpu.vector_store %arg9[%c8_59, %c0_60, %c0_61], %83 {strides = array<i32>} : memref<11x8x1xf32, #tpu.memory_space<vmem>>, vector<1x8x1xf32>,
    %c9 = arith.constant 9 : index
    %c0_62 = arith.constant 0 : index
    %c0_63 = arith.constant 0 : index
    %84 = vector.load %arg9[%c9, %c0_62, %c0_63] : memref<11x8x1xf32, #tpu.memory_space<vmem>>, vector<1x8x1xf32>
    %85 = vector.shape_cast %84 : vector<1x8x1xf32> to vector<8x1xf32>
    %86 = arith.mulf %3, %75 : vector<8x4096xf32>
    %cst_64 = arith.constant dense<0.000000e+00> : vector<8xf32>
    %87 = vector.multi_reduction <add>, %86, %cst_64 [1] : vector<8x4096xf32> to vector<8xf32>
    %88 = vector.shape_cast %87 : vector<8xf32> to vector<8x1xf32>
    %89 = arith.addf %85, %88 : vector<8x1xf32>
    %c9_65 = arith.constant 9 : index
    %c0_66 = arith.constant 0 : index
    %c0_67 = arith.constant 0 : index
    %90 = vector.load %arg9[%c9_65, %c0_66, %c0_67] : memref<11x8x1xf32, #tpu.memory_space<vmem>>, vector<1x8x1xf32>
    %91 = vector.shape_cast %90 : vector<1x8x1xf32> to vector<8x1xf32>
    %92 = vector.shape_cast %89 : vector<8x1xf32> to vector<1x8x1xf32>
    tpu.vector_store %arg9[%c9_65, %c0_66, %c0_67], %92 {strides = array<i32>} : memref<11x8x1xf32, #tpu.memory_space<vmem>>, vector<1x8x1xf32>,
    %c10 = arith.constant 10 : index
    %c0_68 = arith.constant 0 : index
    %c0_69 = arith.constant 0 : index
    %93 = vector.load %arg9[%c10, %c0_68, %c0_69] : memref<11x8x1xf32, #tpu.memory_space<vmem>>, vector<1x8x1xf32>
    %94 = vector.shape_cast %93 : vector<1x8x1xf32> to vector<8x1xf32>
    %95 = arith.mulf %75, %75 : vector<8x4096xf32>
    %cst_70 = arith.constant dense<0.000000e+00> : vector<8xf32>
    %96 = vector.multi_reduction <add>, %95, %cst_70 [1] : vector<8x4096xf32> to vector<8xf32>
    %97 = vector.shape_cast %96 : vector<8xf32> to vector<8x1xf32>
    %98 = arith.addf %94, %97 : vector<8x1xf32>
    %c10_71 = arith.constant 10 : index
    %c0_72 = arith.constant 0 : index
    %c0_73 = arith.constant 0 : index
    %99 = vector.load %arg9[%c10_71, %c0_72, %c0_73] : memref<11x8x1xf32, #tpu.memory_space<vmem>>, vector<1x8x1xf32>
    %100 = vector.shape_cast %99 : vector<1x8x1xf32> to vector<8x1xf32>
    %101 = vector.shape_cast %98 : vector<8x1xf32> to vector<1x8x1xf32>
    tpu.vector_store %arg9[%c10_71, %c0_72, %c0_73], %101 {strides = array<i32>} : memref<11x8x1xf32, #tpu.memory_space<vmem>>, vector<1x8x1xf32>,
    %c3_i32 = arith.constant 3 : i32
    %102 = arith.cmpi eq, %arg1, %c3_i32 : i32
    %103 = arith.extui %102 : i1 to i32
    %c0_i32_74 = arith.constant 0 : i32
    %104 = arith.cmpi ne, %103, %c0_i32_74 : i32
    scf.if %104 {
      %c0_75 = arith.constant 0 : index
      %c0_76 = arith.constant 0 : index
      %c0_77 = arith.constant 0 : index
      %105 = vector.load %arg9[%c0_75, %c0_76, %c0_77] : memref<11x8x1xf32, #tpu.memory_space<vmem>>, vector<1x8x1xf32>
      %106 = vector.shape_cast %105 : vector<1x8x1xf32> to vector<8x1xf32>
      %c1_78 = arith.constant 1 : index
      %c0_79 = arith.constant 0 : index
      %c0_80 = arith.constant 0 : index
      %107 = vector.load %arg9[%c1_78, %c0_79, %c0_80] : memref<11x8x1xf32, #tpu.memory_space<vmem>>, vector<1x8x1xf32>
      %108 = vector.shape_cast %107 : vector<1x8x1xf32> to vector<8x1xf32>
      %109 = arith.mulf %106, %106 : vector<8x1xf32>
      %cst_81 = arith.constant 6.250000e-05 : f32
      %110 = vector.broadcast %cst_81 : f32 to vector<8x1xf32>
      %111 = arith.mulf %109, %110 : vector<8x1xf32>
      %112 = arith.subf %108, %111 : vector<8x1xf32>
      %cst_82 = arith.constant 0.000000e+00 : f32
      %113 = vector.broadcast %cst_82 : f32 to vector<8x1xf32>
      %c2_83 = arith.constant 2 : index
      %c0_84 = arith.constant 0 : index
      %c0_85 = arith.constant 0 : index
      %114 = vector.load %arg9[%c2_83, %c0_84, %c0_85] : memref<11x8x1xf32, #tpu.memory_space<vmem>>, vector<1x8x1xf32>
      %115 = vector.shape_cast %114 : vector<1x8x1xf32> to vector<8x1xf32>
      %c3_86 = arith.constant 3 : index
      %c0_87 = arith.constant 0 : index
      %c0_88 = arith.constant 0 : index
      %116 = vector.load %arg9[%c3_86, %c0_87, %c0_88] : memref<11x8x1xf32, #tpu.memory_space<vmem>>, vector<1x8x1xf32>
      %117 = vector.shape_cast %116 : vector<1x8x1xf32> to vector<8x1xf32>
      %c4_89 = arith.constant 4 : index
      %c0_90 = arith.constant 0 : index
      %c0_91 = arith.constant 0 : index
      %118 = vector.load %arg9[%c4_89, %c0_90, %c0_91] : memref<11x8x1xf32, #tpu.memory_space<vmem>>, vector<1x8x1xf32>
      %119 = vector.shape_cast %118 : vector<1x8x1xf32> to vector<8x1xf32>
      %120 = arith.mulf %106, %115 : vector<8x1xf32>
      %cst_92 = arith.constant 6.250000e-05 : f32
      %121 = vector.broadcast %cst_92 : f32 to vector<8x1xf32>
      %122 = arith.mulf %120, %121 : vector<8x1xf32>
      %123 = arith.subf %117, %122 : vector<8x1xf32>
      %124 = arith.mulf %115, %115 : vector<8x1xf32>
      %cst_93 = arith.constant 6.250000e-05 : f32
      %125 = vector.broadcast %cst_93 : f32 to vector<8x1xf32>
      %126 = arith.mulf %124, %125 : vector<8x1xf32>
      %127 = arith.subf %119, %126 : vector<8x1xf32>
      %128 = arith.divf %123, %112 : vector<8x1xf32>
      %129 = arith.mulf %128, %128 : vector<8x1xf32>
      %130 = arith.mulf %129, %112 : vector<8x1xf32>
      %cst_94 = arith.constant 0.000000e+00 : f32
      %131 = vector.broadcast %cst_94 : f32 to vector<8x1xf32>
      %132 = arith.maximumf %130, %131 : vector<8x1xf32>
      %133 = math.sqrt %132 : vector<8x1xf32>
      %134 = arith.mulf %128, %123 : vector<8x1xf32>
      %135 = arith.subf %127, %134 : vector<8x1xf32>
      %cst_95 = arith.constant 0.000000e+00 : f32
      %136 = vector.broadcast %cst_95 : f32 to vector<8x1xf32>
      %137 = arith.maximumf %135, %136 : vector<8x1xf32>
      %138 = math.sqrt %137 : vector<8x1xf32>
      %cst_96 = arith.constant 9.99999997E-7 : f32
      %139 = vector.broadcast %cst_96 : f32 to vector<8x1xf32>
      %140 = arith.addf %138, %139 : vector<8x1xf32>
      %141 = arith.divf %133, %140 : vector<8x1xf32>
      %cst_97 = arith.constant 9.99999997E-7 : f32
      %142 = vector.broadcast %cst_97 : f32 to vector<8x1xf32>
      %143 = arith.addf %141, %142 : vector<8x1xf32>
      %144 = math.log %143 : vector<8x1xf32>
      %cst_98 = arith.constant 0.434294492 : f32
      %145 = vector.broadcast %cst_98 : f32 to vector<8x1xf32>
      %146 = arith.mulf %144, %145 : vector<8x1xf32>
      %cst_99 = arith.constant 2.000000e+01 : f32
      %147 = vector.broadcast %cst_99 : f32 to vector<8x1xf32>
      %148 = arith.mulf %147, %146 : vector<8x1xf32>
      %cst_100 = arith.constant 8.000000e-01 : f32
      %149 = vector.broadcast %cst_100 : f32 to vector<8x1xf32>
      %150 = arith.mulf %149, %148 : vector<8x1xf32>
      %151 = arith.addf %113, %150 : vector<8x1xf32>
      %c5_101 = arith.constant 5 : index
      %c0_102 = arith.constant 0 : index
      %c0_103 = arith.constant 0 : index
      %152 = vector.load %arg9[%c5_101, %c0_102, %c0_103] : memref<11x8x1xf32, #tpu.memory_space<vmem>>, vector<1x8x1xf32>
      %153 = vector.shape_cast %152 : vector<1x8x1xf32> to vector<8x1xf32>
      %c6_104 = arith.constant 6 : index
      %c0_105 = arith.constant 0 : index
      %c0_106 = arith.constant 0 : index
      %154 = vector.load %arg9[%c6_104, %c0_105, %c0_106] : memref<11x8x1xf32, #tpu.memory_space<vmem>>, vector<1x8x1xf32>
      %155 = vector.shape_cast %154 : vector<1x8x1xf32> to vector<8x1xf32>
      %c7_107 = arith.constant 7 : index
      %c0_108 = arith.constant 0 : index
      %c0_109 = arith.constant 0 : index
      %156 = vector.load %arg9[%c7_107, %c0_108, %c0_109] : memref<11x8x1xf32, #tpu.memory_space<vmem>>, vector<1x8x1xf32>
      %157 = vector.shape_cast %156 : vector<1x8x1xf32> to vector<8x1xf32>
      %158 = arith.mulf %106, %153 : vector<8x1xf32>
      %cst_110 = arith.constant 6.250000e-05 : f32
      %159 = vector.broadcast %cst_110 : f32 to vector<8x1xf32>
      %160 = arith.mulf %158, %159 : vector<8x1xf32>
      %161 = arith.subf %155, %160 : vector<8x1xf32>
      %162 = arith.mulf %153, %153 : vector<8x1xf32>
      %cst_111 = arith.constant 6.250000e-05 : f32
      %163 = vector.broadcast %cst_111 : f32 to vector<8x1xf32>
      %164 = arith.mulf %162, %163 : vector<8x1xf32>
      %165 = arith.subf %157, %164 : vector<8x1xf32>
      %166 = arith.divf %161, %112 : vector<8x1xf32>
      %167 = arith.mulf %166, %166 : vector<8x1xf32>
      %168 = arith.mulf %167, %112 : vector<8x1xf32>
      %cst_112 = arith.constant 0.000000e+00 : f32
      %169 = vector.broadcast %cst_112 : f32 to vector<8x1xf32>
      %170 = arith.maximumf %168, %169 : vector<8x1xf32>
      %171 = math.sqrt %170 : vector<8x1xf32>
      %172 = arith.mulf %166, %161 : vector<8x1xf32>
      %173 = arith.subf %165, %172 : vector<8x1xf32>
      %cst_113 = arith.constant 0.000000e+00 : f32
      %174 = vector.broadcast %cst_113 : f32 to vector<8x1xf32>
      %175 = arith.maximumf %173, %174 : vector<8x1xf32>
      %176 = math.sqrt %175 : vector<8x1xf32>
      %cst_114 = arith.constant 9.99999997E-7 : f32
      %177 = vector.broadcast %cst_114 : f32 to vector<8x1xf32>
      %178 = arith.addf %176, %177 : vector<8x1xf32>
      %179 = arith.divf %171, %178 : vector<8x1xf32>
      %cst_115 = arith.constant 9.99999997E-7 : f32
      %180 = vector.broadcast %cst_115 : f32 to vector<8x1xf32>
      %181 = arith.addf %179, %180 : vector<8x1xf32>
      %182 = math.log %181 : vector<8x1xf32>
      %cst_116 = arith.constant 0.434294492 : f32
      %183 = vector.broadcast %cst_116 : f32 to vector<8x1xf32>
      %184 = arith.mulf %182, %183 : vector<8x1xf32>
      %cst_117 = arith.constant 2.000000e+01 : f32
      %185 = vector.broadcast %cst_117 : f32 to vector<8x1xf32>
      %186 = arith.mulf %185, %184 : vector<8x1xf32>
      %cst_118 = arith.constant 1.000000e-01 : f32
      %187 = vector.broadcast %cst_118 : f32 to vector<8x1xf32>
      %188 = arith.mulf %187, %186 : vector<8x1xf32>
      %189 = arith.addf %151, %188 : vector<8x1xf32>
      %c8_119 = arith.constant 8 : index
      %c0_120 = arith.constant 0 : index
      %c0_121 = arith.constant 0 : index
      %190 = vector.load %arg9[%c8_119, %c0_120, %c0_121] : memref<11x8x1xf32, #tpu.memory_space<vmem>>, vector<1x8x1xf32>
      %191 = vector.shape_cast %190 : vector<1x8x1xf32> to vector<8x1xf32>
      %c9_122 = arith.constant 9 : index
      %c0_123 = arith.constant 0 : index
      %c0_124 = arith.constant 0 : index
      %192 = vector.load %arg9[%c9_122, %c0_123, %c0_124] : memref<11x8x1xf32, #tpu.memory_space<vmem>>, vector<1x8x1xf32>
      %193 = vector.shape_cast %192 : vector<1x8x1xf32> to vector<8x1xf32>
      %c10_125 = arith.constant 10 : index
      %c0_126 = arith.constant 0 : index
      %c0_127 = arith.constant 0 : index
      %194 = vector.load %arg9[%c10_125, %c0_126, %c0_127] : memref<11x8x1xf32, #tpu.memory_space<vmem>>, vector<1x8x1xf32>
      %195 = vector.shape_cast %194 : vector<1x8x1xf32> to vector<8x1xf32>
      %196 = arith.mulf %106, %191 : vector<8x1xf32>
      %cst_128 = arith.constant 6.250000e-05 : f32
      %197 = vector.broadcast %cst_128 : f32 to vector<8x1xf32>
      %198 = arith.mulf %196, %197 : vector<8x1xf32>
      %199 = arith.subf %193, %198 : vector<8x1xf32>
      %200 = arith.mulf %191, %191 : vector<8x1xf32>
      %cst_129 = arith.constant 6.250000e-05 : f32
      %201 = vector.broadcast %cst_129 : f32 to vector<8x1xf32>
      %202 = arith.mulf %200, %201 : vector<8x1xf32>
      %203 = arith.subf %195, %202 : vector<8x1xf32>
      %204 = arith.divf %199, %112 : vector<8x1xf32>
      %205 = arith.mulf %204, %204 : vector<8x1xf32>
      %206 = arith.mulf %205, %112 : vector<8x1xf32>
      %cst_130 = arith.constant 0.000000e+00 : f32
      %207 = vector.broadcast %cst_130 : f32 to vector<8x1xf32>
      %208 = arith.maximumf %206, %207 : vector<8x1xf32>
      %209 = math.sqrt %208 : vector<8x1xf32>
      %210 = arith.mulf %204, %199 : vector<8x1xf32>
      %211 = arith.subf %203, %210 : vector<8x1xf32>
      %cst_131 = arith.constant 0.000000e+00 : f32
      %212 = vector.broadcast %cst_131 : f32 to vector<8x1xf32>
      %213 = arith.maximumf %211, %212 : vector<8x1xf32>
      %214 = math.sqrt %213 : vector<8x1xf32>
      %cst_132 = arith.constant 9.99999997E-7 : f32
      %215 = vector.broadcast %cst_132 : f32 to vector<8x1xf32>
      %216 = arith.addf %214, %215 : vector<8x1xf32>
      %217 = arith.divf %209, %216 : vector<8x1xf32>
      %cst_133 = arith.constant 9.99999997E-7 : f32
      %218 = vector.broadcast %cst_133 : f32 to vector<8x1xf32>
      %219 = arith.addf %217, %218 : vector<8x1xf32>
      %220 = math.log %219 : vector<8x1xf32>
      %cst_134 = arith.constant 0.434294492 : f32
      %221 = vector.broadcast %cst_134 : f32 to vector<8x1xf32>
      %222 = arith.mulf %220, %221 : vector<8x1xf32>
      %cst_135 = arith.constant 2.000000e+01 : f32
      %223 = vector.broadcast %cst_135 : f32 to vector<8x1xf32>
      %224 = arith.mulf %223, %222 : vector<8x1xf32>
      %cst_136 = arith.constant 1.000000e-01 : f32
      %225 = vector.broadcast %cst_136 : f32 to vector<8x1xf32>
      %226 = arith.mulf %225, %224 : vector<8x1xf32>
      %227 = arith.addf %189, %226 : vector<8x1xf32>
      %cst_137 = arith.constant 0.000000e+00 : f32
      %228 = vector.broadcast %cst_137 : f32 to vector<8x1xf32>
      %229 = arith.subf %228, %227 : vector<8x1xf32>
      %c0_138 = arith.constant 0 : index
      %c0_139 = arith.constant 0 : index
      %230 = vector.load %arg6[%c0_138, %c0_139] : memref<8x16xf32, #tpu.memory_space<vmem>>, vector<8x16xf32>
      %c0_140 = arith.constant 0 : index
      %c0_141 = arith.constant 0 : index
      %231 = vector.load %arg7[%c0_140, %c0_141] : memref<8x1xi32, #tpu.memory_space<vmem>>, vector<8x1xi32>
      %cst_142 = arith.constant dense<0xFF800000> : vector<8xf32>
      %232 = vector.multi_reduction <maximumf>, %230, %cst_142 [1] : vector<8x16xf32> to vector<8xf32>
      %233 = vector.shape_cast %232 : vector<8xf32> to vector<8x1xf32>
      %234 = vector.broadcast %233 : vector<8x1xf32> to vector<8x16xf32>
      %235 = arith.subf %230, %234 : vector<8x16xf32>
      %236 = math.exp %235 : vector<8x16xf32>
      %cst_143 = arith.constant dense<0.000000e+00> : vector<8xf32>
      %237 = vector.multi_reduction <add>, %236, %cst_143 [1] : vector<8x16xf32> to vector<8xf32>
      %238 = vector.shape_cast %237 : vector<8xf32> to vector<8x1xf32>
      %239 = math.log %238 : vector<8x1xf32>
      %240 = arith.addf %233, %239 : vector<8x1xf32>
      %241 = tpu.iota {dimensions = array<i32: 1>} : vector<8x16xi32>
      %242 = vector.broadcast %231 : vector<8x1xi32> to vector<8x16xi32>
      %243 = arith.cmpi eq, %241, %242 : vector<8x16xi32>
      %cst_144 = arith.constant 0.000000e+00 : f32
      %244 = vector.broadcast %cst_144 : f32 to vector<8x16xf32>
      %245 = arith.select %243, %230, %244 : vector<8x16xi1>, vector<8x16xf32>
      %cst_145 = arith.constant dense<0.000000e+00> : vector<8xf32>
      %246 = vector.multi_reduction <add>, %245, %cst_145 [1] : vector<8x16xf32> to vector<8xf32>
      %247 = vector.shape_cast %246 : vector<8xf32> to vector<8x1xf32>
      %248 = arith.subf %240, %247 : vector<8x1xf32>
      %cst_146 = arith.constant 5.000000e-01 : f32
      %249 = vector.broadcast %cst_146 : f32 to vector<8x1xf32>
      %250 = arith.mulf %249, %248 : vector<8x1xf32>
      %251 = arith.addf %229, %250 : vector<8x1xf32>
      %c0_147 = arith.constant 0 : index
      %c0_148 = arith.constant 0 : index
      %252 = vector.load %arg8[%c0_147, %c0_148] : memref<8x1xf32, #tpu.memory_space<vmem>>, vector<8x1xf32>
      tpu.vector_store %arg8[%c0_147, %c0_148], %251 {strides = array<i32>} : memref<8x1xf32, #tpu.memory_space<vmem>>, vector<8x1xf32>,
    } else {
    }
    return
  }
  func.func @transform_0(%arg0: i32, %arg1: i32) -> (i32, i32) {
    %c0_i32 = arith.constant 0 : i32
    return %arg0, %arg1 : i32, i32
  }
  func.func @transform_1(%arg0: i32, %arg1: i32) -> (i32, i32) {
    %c0_i32 = arith.constant 0 : i32
    return %arg0, %arg1 : i32, i32
  }
  func.func @transform_2(%arg0: i32, %arg1: i32) -> (i32, i32) {
    %c0_i32 = arith.constant 0 : i32
    return %arg0, %arg1 : i32, i32
  }
  func.func @transform_3(%arg0: i32, %arg1: i32) -> (i32, i32) {
    %c0_i32 = arith.constant 0 : i32
    return %arg0, %arg1 : i32, i32
  }
  func.func @transform_4(%arg0: i32, %arg1: i32) -> (i32, i32) {
    %c0_i32 = arith.constant 0 : i32
    %c0_i32_0 = arith.constant 0 : i32
    return %arg0, %c0_i32 : i32, i32
  }
  func.func @transform_5(%arg0: i32, %arg1: i32) -> (i32, i32) {
    %c0_i32 = arith.constant 0 : i32
    %c0_i32_0 = arith.constant 0 : i32
    return %arg0, %c0_i32 : i32, i32
  }
  func.func @transform_6(%arg0: i32, %arg1: i32) -> (i32, i32) {
    %c0_i32 = arith.constant 0 : i32
    %c0_i32_0 = arith.constant 0 : i32
    return %arg0, %c0_i32 : i32, i32
  }
}

</mosaic_0001>

<bundles_post_ra>
// kernel: tpu_custom_call.1
= control target key start
LH: loop header
LB: loop body
LE: loop exit
PB: predicated region body
PF: predicated region fallthrough
CT: control target
= control target key end

     0   :  { %s3235_s0 = inlined_call_operand.hbm [shape: f32[8,16384], index: 0, kind: input, shape index: {}]   ;;  %s3236_s1 = inlined_call_operand.hbm [shape: f32[8,16384], index: 1, kind: input, shape index: {}]   ;;  %s3237_s2 = inlined_call_operand.hbm [shape: f32[8,16384], index: 2, kind: input, shape index: {}]   ;;  %s3238_s3 = inlined_call_operand.hbm [shape: f32[8,16384], index: 3, kind: input, shape index: {}]   ;;  %s3239_s4 = inlined_call_operand.vmem [shape: f32[8,16], index: 4, kind: input, shape index: {}]   ;;  %s3240_s5 = inlined_call_operand.vmem [shape: s32[8,1], index: 5, kind: input, shape index: {}]   ;;  %s3241_s6 = inlined_call_operand.vmem [shape: f32[8,1], index: 6, kind: output, shape index: {}]  }
   0x1   :  { %3320 = sst [smem:[#allocation65_spill]] %s3235_s0 }
   0x2   :  { %3321 = sst [smem:[#allocation66_spill]] %s3236_s1 }
   0x3   :  { %11 = vsyncpa [#allocation4], 0 }
   0x4   :  { %13 = vsyncpa [#allocation4 + $0x1], 0 }
   0x5   :  { %14 = vsyncpa [#allocation6], 0 }
   0x6   :  { %16 = vsyncpa [#allocation6 + $0x1], 0 }
   0x7   :  { %17 = vsyncpa [#allocation9], 0 }
   0x8   :  { %19 = vsyncpa [#allocation9 + $0x1], 0  ;;  %s2018_s21 = smov 0   ;;  %s2020_s22 = smov 0  }
   0x9   :  { %s2022_s23 = smov 0   ;;  %s2024_s24 = smov 0  }
   0xa   :  { %s2026_s25 = smov 0   ;;  %s2028_s26 = smov 0  }
   0xb LB: > { %3322 = sst [smem:[#allocation13_spill]] %s1975_s25  ;;  %s3242_s27 = sadd.s32 4294967295, %s1979_s26   ;;  %s1979_s26 = sphi %s2028_s26, %s25_s26   ;;  %s1975_s25 = sphi %s2026_s25, %s3437_s25   ;;  %s1971_s24 = sphi %s2024_s24, %s3436_s24   ;;  %s1967_s23 = sphi %s2022_s23, %s3440_s23   ;;  %s1963_s22 = sphi %s2020_s22, %s3439_s22   ;;  %s1959_s21 = sphi %s2018_s21, %s3438_s21  }
   0xc   : > { %s34_s28 = sadd.s32 1, %s1975_s25  ;;  %s46_s29 = sadd.s32 1, %s1967_s23 }
   0xd   : > { %p35_p0 = scmp.ge.s32.totalorder %s34_s28, 4  ;;  %p53_p1 = scmp.ne.s32.totalorder %s1967_s23, %s1963_s22 }
   0xe   : > { %p54_p2 = scmp.eq.s32.totalorder %s1979_s26, 0  ;;  %p59_p4 = scmp.ne.s32.totalorder %s1963_s22, %s1959_s21 }
   0xf   : > { %s3442_s28 = smov (%p35_p0, %s34_s28), 0  ;;  %p60_p5 = scmp.eq.s32.totalorder %s3242_s27, 0 }
  0x10   : > { %3323 = sst [smem:[#allocation14_spill]] %s3442_s28  ;;  %p55_p3 = por %p54_p2, %p53_p1 }
  0x11   : > { %s42_s30 = ssub.s32 %s1975_s25, %s3442_s28  ;;  %p2059_p7 = por %p60_p5, %p59_p4 }
  0x12   : > { %p44_p6 = scmp.eq.s32.totalorder %s42_s30, 0  ;;  %p1700_p8 = scmp.lt.s32.totalorder %s1979_s26, 4 }
  0x13   : > { %s2068_s9 = sand.u32 1, %s1967_s23   ;;  %s2071_s10 = sshll.u32 %s1975_s25, 8 }
  0x14   : > { %s2065_s8 = scalar_select %p44_p6, %s1967_s23, %s46_s29  }
  0x15   : > { %s2074_s11 = sshll.u32 %s2068_s9, 8  ;;  %p2076_p9 = pnand %p1700_p8, %p55_p3 }
  0x16   : > { %3325 = sst [smem:[#allocation15_spill]] %s2065_s8  ;;  %s281_s13 = sand.u32 1, %s1979_s26  }
  0x17   : > { %s3327_s1 = sld [smem:[#allocation66_spill]]  ;;  %s285_s17 = scalar_lea.vmem [#allocation5], %s2074_s11 }
  0x18   : > { %s296_s18 = sshll.u32 %s285_s17, 4  ;;  %p1665_p10 = scmp.ge.s32.totalorder %s1979_s26, 1  ;;  %s297_s18 = int_to_ptr.vmem [resolvable:$true] %s296_s18 }
  0x19   : > { %s282_s20 = scalar_lea.sflag [#allocation6], %s281_s13  ;;  %p345_p11 = scmp.lt.s32.totalorder %s1979_s26, 5 }
  0x1a   : > { %s3329_s0 = sld [smem:[#allocation65_spill]]  ;;  %s263_s15 = scalar_lea.vmem [#allocation3], %s2074_s11 }
  0x1b   : > { %p2090_p12 = pnand %p1665_p10, %p345_p11  ;;  %s260_s13 = scalar_lea.sflag [#allocation4], %s2068_s9 }
  0x1c   : > { %s314_s27 = scalar_lea.hbm %s3237_s2, %s2071_s10  ;;  %s329_s25 = scalar_lea.vmem [#allocation8], %s2074_s11 }
  0x1d   : > { %s292_s16 = scalar_lea.hbm %s3327_s1, %s2071_s10  ;;  %s307_s1 = scalar_lea.vmem [#allocation7], %s2074_s11 }
  0x1e   : > { %s294_s19 = sshll.u32 %s292_s16, 4  ;;  %s274_s16 = sshll.u32 %s263_s15, 4  ;;  %s295_s19 = int_to_ptr.hbm [resolvable:$true] %s294_s19  ;;  %s275_s16 = int_to_ptr.vmem [resolvable:$true] %s274_s16 }
  0x1f   : > { %1693 = dma.hbm_to_vmem [thread:$0]  (!%p2076_p9), %s295_s19, 4096, %s297_s18, %s282_s20  }
  0x20   : > { %s270_s14 = scalar_lea.hbm %s3329_s0, %s2071_s10  ;;  %s318_s28 = sshll.u32 %s307_s1, 4  ;;  %s319_s28 = int_to_ptr.vmem [resolvable:$true] %s318_s28 }
  0x21   : > { %s272_s17 = sshll.u32 %s270_s14, 4  ;;  %s316_s29 = sshll.u32 %s314_s27, 4  ;;  %s273_s17 = int_to_ptr.hbm [resolvable:$true] %s272_s17  ;;  %s317_s29 = int_to_ptr.hbm [resolvable:$true] %s316_s29 }
  0x22   : > { %1690 = dma.hbm_to_vmem [thread:$0]  (!%p2076_p9), %s273_s17, 4096, %s275_s16, %s260_s13  }
  0x23   : > { %1696 = dma.hbm_to_vmem [thread:$0]  (!%p2076_p9), %s317_s29, 4096, %s319_s28, %s282_s20  }
  0x24   : > { %s336_s15 = scalar_lea.hbm %s3238_s3, %s2071_s10  ;;  %s340_s8 = sshll.u32 %s329_s25, 4  ;;  %s341_s8 = int_to_ptr.vmem [resolvable:$true] %s340_s8 }
  0x25   : > { %s338_s0 = sshll.u32 %s336_s15, 4  ;;  %s326_s16 = scalar_lea.sflag [#allocation9], %s2068_s9  ;;  %s339_s0 = int_to_ptr.hbm [resolvable:$true] %s338_s0 }
  0x26   : > { %1699 = dma.hbm_to_vmem [thread:$0]  (!%p2076_p9), %s339_s0, 4096, %s341_s8, %s326_s16  }
  0x27   : > { %349 = sbr.rel (%p2090_p12) target bundleno = 644 (0x284), region = 44 }
  0x2c   : > { %s351_s1 = sand.u32 1, %s1963_s22  }
  0x2d   : > { %s1666_s27 = sshll.u32 %s351_s1, 8  ;;  %s352_s28 = scalar_lea.sflag [#allocation4], %s351_s1 }
  0x2e   : > { %s2120_s20 = scalar_lea.vmem [#allocation3], %s1666_s27 }
  0x2f   : > { %1946 = dma.done.wait (%p2059_p7), %s352_s28, 4096  }
  0x30   : > { %1948 = vsyncadd (%p2059_p7), %s352_s28, 4294963200  ;;  %s3330_s25 = sadd.s32 4294967295, %s1979_s26   ;;  %s2128_s8 = scalar_lea.vmem [#allocation5], %s1666_s27 }
  0x31   : > { %s361_s9 = sand.u32 1, %s3330_s25  }
  0x32   : > { %s362_s0 = scalar_lea.sflag [#allocation6], %s361_s9 }
  0x33   : > { %1950 = dma.done.wait (%p2059_p7), %s362_s0, 8192  }
  0x34   : > { %1952 = vsyncadd (%p2059_p7), %s362_s0, 4294959104  ;;  %s2134_s10 = scalar_lea.vmem [#allocation7], %s1666_s27  ;;  %s382_s11 = scalar_lea.sflag [#allocation9], %s351_s1 }
  0x35   : > { %s2136_s12 = scalar_lea.vmem [#allocation8], %s1666_s27 }
  0x36   : > { %1954 = dma.done.wait (%p2059_p7), %s382_s11, 4096  }
  0x37   : > { %1956 = vsyncadd (%p2059_p7), %s382_s11, 4294963200  ;;  %p1670_p13 = scmp.ne.s32.totalorder %s1971_s24, 0 }
  0x39   : > { %456 = sbr.rel (%p1670_p13) target bundleno = 74 (0x4a), region = 64 }
  0x3e   : > { %vm457_vm0 = vcmask 7168   ;;  %v1981_v0 = vmov 0.0  }
  0x3f   : > { %458 = vst.msk [vmem:[#allocation2] sm:$0xff] %vm457_vm0, %v1981_v0 }
  0x40   : > { %459 = vst.msk [vmem:[#allocation2 + $0x8] sm:$0xff] %vm457_vm0, %v1981_v0 }
  0x41   : > { %460 = vst.msk [vmem:[#allocation2 + $0x10] sm:$0xff] %vm457_vm0, %v1981_v0 }
  0x42   : > { %461 = vst.msk [vmem:[#allocation2 + $0x18] sm:$0xff] %vm457_vm0, %v1981_v0 }
  0x43   : > { %462 = vst.msk [vmem:[#allocation2 + $0x20] sm:$0xff] %vm457_vm0, %v1981_v0 }
  0x44   : > { %463 = vst.msk [vmem:[#allocation2 + $0x28] sm:$0xff] %vm457_vm0, %v1981_v0 }
  0x45   : > { %464 = vst.msk [vmem:[#allocation2 + $0x30] sm:$0xff] %vm457_vm0, %v1981_v0 }
  0x46   : > { %465 = vst.msk [vmem:[#allocation2 + $0x38] sm:$0xff] %vm457_vm0, %v1981_v0 }
  0x47   : > { %466 = vst.msk [vmem:[#allocation2 + $0x40] sm:$0xff] %vm457_vm0, %v1981_v0 }
  0x48   : > { %467 = vst.msk [vmem:[#allocation2 + $0x48] sm:$0xff] %vm457_vm0, %v1981_v0 }
  0x49   : > { %468 = vst.msk [vmem:[#allocation2 + $0x50] sm:$0xff] %vm457_vm0, %v1981_v0 }
  0x4a PF: > { %v2144_v1 = vld [vmem:[%s2120_s20] sm:$0xff]  ;;  %v2147_v2 = vld [vmem:[%s2120_s20 + $0x8] sm:$0xff]  ;;  %v2150_v3 = vld [vmem:[%s2120_s20 + $0x10] sm:$0xff]  ;;  %vm536_vm1 = vcmask 7168   ;;  %p1671_p0 = scmp.ne.s32.totalorder %s1971_s24, 3 }
  0x4b   : > { %v641_v4 = vadd.f32 %v2147_v2, %v2144_v1  ;;  %v2155_v5 = vld [vmem:[%s2120_s20 + $0x18] sm:$0xff]  ;;  %v2159_v7 = vld [vmem:[%s2120_s20 + $0x20] sm:$0xff]  ;;  %v2163_v9 = vld [vmem:[%s2120_s20 + $0x28] sm:$0xff] }
  0x4c   : > { %v2167_v11 = vld [vmem:[%s2120_s20 + $0x30] sm:$0xff]  ;;  %v2171_v13 = vld [vmem:[%s2120_s20 + $0x38] sm:$0xff]  ;;  %v2174_v14 = vld [vmem:[%s2136_s12] sm:$0xff] }
  0x4d   : > { %v642_v6 = vadd.f32 %v641_v4, %v2150_v3  ;;  %3331 = vst [vmem:[#allocation16_spill] sm:$0xff] %v2174_v14  ;;  %v2178_v16 = vld [vmem:[%s2136_s12 + $0x8] sm:$0xff]  ;;  %v2181_v17 = vld [vmem:[%s2136_s12 + $0x10] sm:$0xff]  ;;  %v2184_v18 = vld [vmem:[%s2120_s20 + $0x40] sm:$0xff]  ;;  %v678_v22 = vmul.f32 %v2144_v1, %v2174_v14 }
  0x4e   : > { %3332 = vst [vmem:[#allocation17_spill] sm:$0xff] %v2178_v16  ;;  %v502_v19 = vadd.f32 %v2178_v16, %v2174_v14  ;;  %v2190_v21 = vld [vmem:[%s2136_s12 + $0x18] sm:$0xff]  ;;  %v679_v23 = vmul.f32 %v2147_v2, %v2178_v16  ;;  %v2197_v24 = vld [vmem:[%s2120_s20 + $0x48] sm:$0xff]  ;;  %v2202_v27 = vld [vmem:[%s2136_s12 + $0x20] sm:$0xff]  ;;  %v680_v28 = vmul.f32 %v2150_v3, %v2181_v17 }
  0x4f   : > { %v643_v8 = vadd.f32 %v642_v6, %v2155_v5  ;;  %3333 = vst [vmem:[#allocation18_spill] sm:$0xff] %v2181_v17  ;;  %v2207_v29 = vld [vmem:[%s2120_s20 + $0x50] sm:$0xff]  ;;  %v2212_v32 = vld [vmem:[%s2136_s12 + $0x28] sm:$0xff]  ;;  %v2215_v33 = vld [vmem:[%s2128_s8] sm:$0xff]  ;;  %v681_v34 = vmul.f32 %v2155_v5, %v2190_v21  ;;  %v682_v43 = vmul.f32 %v2159_v7, %v2202_v27 }
  0x50   : > { %3334 = vst [vmem:[#allocation19_spill] sm:$0xff] %v2190_v21  ;;  %v503_v25 = vadd.f32 %v502_v19, %v2181_v17  ;;  %v710_v35 = vadd.f32 %v679_v23, %v678_v22  ;;  %v2220_v36 = vld [vmem:[%s2120_s20 + $0x58] sm:$0xff]  ;;  %v2224_v38 = vld [vmem:[%s2128_s8 + $0x8] sm:$0xff]  ;;  %v2227_v39 = vld [vmem:[%s2128_s8 + $0x10] sm:$0xff]  ;;  %v683_v51 = vmul.f32 %v2163_v9, %v2212_v32 }
  0x51   : > { %v644_v10 = vadd.f32 %v643_v8, %v2159_v7  ;;  %3335 = vst [vmem:[#allocation20_spill] sm:$0xff] %v2202_v27  ;;  %v2231_v41 = vld [vmem:[%s2136_s12 + $0x30] sm:$0xff]  ;;  %v848_v42 = vadd.f32 %v2224_v38, %v2215_v33  ;;  %v2238_v45 = vld [vmem:[%s2120_s20 + $0x60] sm:$0xff]  ;;  %v2242_v47 = vld [vmem:[%s2128_s8 + $0x18] sm:$0xff] }
  0x52   : > { %v504_v30 = vadd.f32 %v503_v25, %v2190_v21  ;;  %3336 = vst [vmem:[#allocation21_spill] sm:$0xff] %v2212_v32  ;;  %v711_v44 = vadd.f32 %v710_v35, %v680_v28  ;;  %v2246_v49 = vld [vmem:[%s2136_s12 + $0x38] sm:$0xff]  ;;  %v2252_v53 = vld [vmem:[%s2120_s20 + $0x68] sm:$0xff]  ;;  %v2256_v55 = vld [vmem:[%s2128_s8 + $0x20] sm:$0xff]  ;;  %v684_v59 = vmul.f32 %v2167_v11, %v2231_v41  ;;  %v540_v35 = vmul.f32 %v2174_v14, %v2174_v14 }
  0x53   : > { %v645_v12 = vadd.f32 %v644_v10, %v2163_v9  ;;  %3337 = vst [vmem:[#allocation22_spill] sm:$0xff] %v2231_v41  ;;  %v849_v50 = vadd.f32 %v848_v42, %v2227_v39  ;;  %v2260_v57 = vld [vmem:[%s2136_s12 + $0x40] sm:$0xff]  ;;  %v2266_v61 = vld [vmem:[%s2120_s20 + $0x70] sm:$0xff]  ;;  %v2270_v63 = vld [vmem:[%s2128_s8 + $0x28] sm:$0xff]  ;;  %v685_v8 = vmul.f32 %v2171_v13, %v2246_v49 }
  0x54   : > { %v505_v37 = vadd.f32 %v504_v30, %v2202_v27  ;;  %3338 = vst [vmem:[#allocation23_spill] sm:$0xff] %v2246_v49  ;;  %v712_v52 = vadd.f32 %v711_v44, %v681_v34  ;;  %v2274_v4 = vld [vmem:[%s2136_s12 + $0x48] sm:$0xff]  ;;  %v2284_v19 = vld [vmem:[%s2128_s8 + $0x30] sm:$0xff]  ;;  %v686_v25 = vmul.f32 %v2184_v18, %v2260_v57  ;;  %v2294_v28 = vld [vmem:[%s2120_s20 + $0x80] sm:$0xff]  ;;  %v541_v44 = vmul.f32 %v2178_v16, %v2178_v16 }
  0x55   : > { %v646_v15 = vadd.f32 %v645_v12, %v2167_v11  ;;  %3339 = vst [vmem:[#allocation24_spill] sm:$0xff] %v2260_v57  ;;  %v850_v58 = vadd.f32 %v849_v50, %v2242_v47  ;;  %v2280_v12 = vld [vmem:[%s2120_s20 + $0x78] sm:$0xff]  ;;  %v2288_v22 = vld [vmem:[%s2136_s12 + $0x50] sm:$0xff]  ;;  %v687_v34 = vmul.f32 %v2197_v24, %v2274_v4  ;;  %v2316_v50 = vld [vmem:[%s2128_s8 + $0x40] sm:$0xff] }
  0x56   : > { %v506_v46 = vadd.f32 %v505_v37, %v2212_v32  ;;  %v713_v60 = vadd.f32 %v712_v52, %v682_v43  ;;  %3340 = vst [vmem:[#allocation25_spill] sm:$0xff] %v2274_v4  ;;  %v2404_v16 = vld [vmem:[%s2136_s12 + $0x88] sm:$0xff]  ;;  %v2420_v14 = vld [vmem:[%s2136_s12 + $0x90] sm:$0xff] }
  0x57   : > { %v647_v20 = vadd.f32 %v646_v15, %v2171_v13  ;;  %v851_v6 = vadd.f32 %v850_v58, %v2256_v55  ;;  %3341 = vst [vmem:[#allocation26_spill] sm:$0xff] %v2284_v19 }
  0x58   : > { %v507_v54 = vadd.f32 %v506_v46, %v2231_v41  ;;  %v714_v10 = vadd.f32 %v713_v60, %v683_v51  ;;  %3342 = vst [vmem:[#allocation27_spill] sm:$0xff] %v2288_v22  ;;  %v2312_v46 = vld [vmem:[%s2120_s20 + $0x88] sm:$0xff]  ;;  %v688_v51 = vmul.f32 %v2207_v29, %v2288_v22  ;;  %v2328_v60 = vld [vmem:[%s2120_s20 + $0x90] sm:$0xff] }
  0x59   : > { %v648_v26 = vadd.f32 %v647_v20, %v2184_v18  ;;  %v852_v23 = vadd.f32 %v851_v6, %v2270_v63  ;;  %3345 = vst [vmem:[#allocation30_spill] sm:$0xff] %v2316_v50 }
  0x5a   : > { %v508_v62 = vadd.f32 %v507_v54, %v2246_v49  ;;  %v2322_v54 = vld [vmem:[%s2136_s12 + $0x60] sm:$0xff]  ;;  %3347 = vst [vmem:[#allocation32_spill] sm:$0xff] %v2328_v60 }
  0x5b   : > { %v649_v31 = vadd.f32 %v648_v26, %v2197_v24  ;;  %v715_v26 = vadd.f32 %v714_v10, %v684_v59  ;;  %v853_v42 = vadd.f32 %v852_v23, %v2284_v19  ;;  %3346 = vst [vmem:[#allocation31_spill] sm:$0xff] %v2322_v54  ;;  %v542_v59 = vmul.f32 %v2181_v17, %v2181_v17  ;;  %v2372_v17 = vld [vmem:[%s2136_s12 + $0x78] sm:$0xff] }
  0x5c   : > { %v509_v15 = vadd.f32 %v508_v62, %v2260_v57  ;;  %3354 = vst [vmem:[#allocation39_spill] sm:$0xff] %v2372_v17 }
  0x5d   : > { %v650_v40 = vadd.f32 %v649_v31, %v2207_v29  ;;  %v2298_v31 = vld [vmem:[%s2128_s8 + $0x38] sm:$0xff]  ;;  %v716_v43 = vadd.f32 %v715_v26, %v685_v8  ;;  %v543_v8 = vmul.f32 %v2190_v21, %v2190_v21  ;;  %3360 = vst [vmem:[#allocation45_spill] sm:$0xff] %v2404_v16 }
  0x5e   : > { %v510_v30 = vadd.f32 %v509_v15, %v2274_v4  ;;  %3343 = vst [vmem:[#allocation28_spill] sm:$0xff] %v2298_v31  ;;  %v2340_v15 = vld [vmem:[%s2136_s12 + $0x68] sm:$0xff]  ;;  %v2344_v26 = vld [vmem:[%s2120_s20 + $0x98] sm:$0xff] }
  0x5f   : > { %v651_v48 = vadd.f32 %v650_v40, %v2220_v36  ;;  %v2306_v40 = vld [vmem:[%s2136_s12 + $0x58] sm:$0xff]  ;;  %v717_v58 = vadd.f32 %v716_v43, %v686_v25  ;;  %3349 = vst [vmem:[#allocation34_spill] sm:$0xff] %v2340_v15  ;;  %v572_v25 = vadd.f32 %v541_v44, %v540_v35  ;;  %v544_v43 = vmul.f32 %v2202_v27, %v2202_v27 }
  0x60   : > { %3344 = vst [vmem:[#allocation29_spill] sm:$0xff] %v2306_v40  ;;  %v689_v6 = vmul.f32 %v2220_v36, %v2306_v40  ;;  %v691_v27 = vmul.f32 %v2252_v53, %v2340_v15 }
  0x61   : > { %v652_v56 = vadd.f32 %v651_v48, %v2238_v45  ;;  %v511_v48 = vadd.f32 %v510_v30, %v2288_v22  ;;  %v718_v23 = vadd.f32 %v717_v58, %v687_v34  ;;  %3350 = vst [vmem:[#allocation35_spill] sm:$0xff] %v2344_v26  ;;  %v573_v44 = vadd.f32 %v572_v25, %v542_v59 }
  0x63   : > { %v653_v0 = vadd.f32 %v652_v56, %v2252_v53  ;;  %v854_v56 = vadd.f32 %v853_v42, %v2298_v31  ;;  %v512_v62 = vadd.f32 %v511_v48, %v2306_v40  ;;  %v690_v42 = vmul.f32 %v2238_v45, %v2322_v54  ;;  %v2446_v31 = vld [vmem:[%s2128_s8 + $0x80] sm:$0xff] }
  0x64   : > { %v719_v35 = vadd.f32 %v718_v23, %v688_v51  ;;  %v2376_v23 = vld [vmem:[%s2120_s20 + $0xa8] sm:$0xff]  ;;  %3365 = vst [vmem:[#allocation50_spill] sm:$0xff] %v2446_v31 }
  0x65   : > { %v654_v20 = vadd.f32 %v653_v0, %v2266_v61  ;;  %v2332_v0 = vld [vmem:[%s2128_s8 + $0x48] sm:$0xff]  ;;  %v513_v30 = vadd.f32 %v512_v62, %v2322_v54  ;;  %v2364_v62 = vld [vmem:[%s2128_s8 + $0x58] sm:$0xff]  ;;  %3355 = vst [vmem:[#allocation40_spill] sm:$0xff] %v2376_v23 }
  0x66   : > { %3348 = vst [vmem:[#allocation33_spill] sm:$0xff] %v2332_v0  ;;  %v720_v59 = vadd.f32 %v719_v35, %v689_v6  ;;  %v2392_v35 = vld [vmem:[%s2120_s20 + $0xb0] sm:$0xff] }
  0x67   : > { %v655_v37 = vadd.f32 %v654_v20, %v2280_v12  ;;  %v855_v20 = vadd.f32 %v854_v56, %v2316_v50  ;;  %v2360_v56 = vld [vmem:[%s2120_s20 + $0xa0] sm:$0xff]  ;;  %v514_v58 = vadd.f32 %v513_v30, %v2340_v15  ;;  %3353 = vst [vmem:[#allocation38_spill] sm:$0xff] %v2364_v62 }
  0x68   : > { %v2380_v30 = vld [vmem:[%s2128_s8 + $0x60] sm:$0xff]  ;;  %3358 = vst [vmem:[#allocation43_spill] sm:$0xff] %v2392_v35 }
  0x69   : > { %v656_v52 = vadd.f32 %v655_v37, %v2294_v28  ;;  %v2348_v37 = vld [vmem:[%s2128_s8 + $0x50] sm:$0xff]  ;;  %v856_v34 = vadd.f32 %v855_v20, %v2332_v0  ;;  %v574_v20 = vadd.f32 %v573_v44, %v543_v8  ;;  %3356 = vst [vmem:[#allocation41_spill] sm:$0xff] %v2380_v30  ;;  %v2388_v50 = vld [vmem:[%s2136_s12 + $0x80] sm:$0xff]  ;;  %v721_v8 = vadd.f32 %v720_v59, %v690_v42  ;;  %v2408_v59 = vld [vmem:[%s2120_s20 + $0xb8] sm:$0xff] }
  0x6a   : > { %3351 = vst [vmem:[#allocation36_spill] sm:$0xff] %v2348_v37 }
  0x6b   : > { %v657_v10 = vadd.f32 %v656_v52, %v2312_v46  ;;  %v2356_v52 = vld [vmem:[%s2136_s12 + $0x70] sm:$0xff]  ;;  %v857_v51 = vadd.f32 %v856_v34, %v2348_v37  ;;  %3357 = vst [vmem:[#allocation42_spill] sm:$0xff] %v2388_v50  ;;  %v575_v34 = vadd.f32 %v574_v20, %v544_v43  ;;  %v722_v43 = vadd.f32 %v721_v8, %v691_v27  ;;  %v2424_v8 = vld [vmem:[%s2120_s20 + $0xc0] sm:$0xff] }
  0x6c   : > { %3352 = vst [vmem:[#allocation37_spill] sm:$0xff] %v2356_v52  ;;  %v515_v25 = vadd.f32 %v514_v58, %v2356_v52  ;;  %v2396_v58 = vld [vmem:[%s2128_s8 + $0x68] sm:$0xff] }
  0x6d   : > { %v658_v48 = vadd.f32 %v657_v10, %v2328_v60  ;;  %v545_v10 = vmul.f32 %v2212_v32, %v2212_v32  ;;  %v692_v32 = vmul.f32 %v2266_v61, %v2356_v52  ;;  %v858_v6 = vadd.f32 %v857_v51, %v2364_v62  ;;  %3359 = vst [vmem:[#allocation44_spill] sm:$0xff] %v2396_v58 }
  0x6e   : > { %v516_v44 = vadd.f32 %v515_v25, %v2372_v17  ;;  %3361 = vst [vmem:[#allocation46_spill] sm:$0xff] %v2408_v59  ;;  %v2412_v25 = vld [vmem:[%s2128_s8 + $0x70] sm:$0xff] }
  0x6f   : > { %v659_v21 = vadd.f32 %v658_v48, %v2344_v26  ;;  %v546_v48 = vmul.f32 %v2231_v41, %v2231_v41  ;;  %v693_v41 = vmul.f32 %v2280_v12, %v2372_v17  ;;  %v859_v42 = vadd.f32 %v858_v6, %v2380_v30  ;;  %3362 = vst [vmem:[#allocation47_spill] sm:$0xff] %v2412_v25 }
  0x70   : > { %v576_v51 = vadd.f32 %v575_v34, %v545_v10  ;;  %v517_v20 = vadd.f32 %v516_v44, %v2388_v50  ;;  %v723_v10 = vadd.f32 %v722_v43, %v692_v32  ;;  %v2428_v44 = vld [vmem:[%s2128_s8 + $0x78] sm:$0xff]  ;;  %v747_v30 = vmul.f32 %v2144_v1, %v2144_v1 }
  0x71   : > { %v660_v0 = vadd.f32 %v659_v21, %v2360_v56  ;;  %v547_v21 = vmul.f32 %v2246_v49, %v2246_v49  ;;  %v694_v49 = vmul.f32 %v2294_v28, %v2388_v50  ;;  %v860_v27 = vadd.f32 %v859_v42, %v2396_v58  ;;  %3363 = vst [vmem:[#allocation48_spill] sm:$0xff] %v2428_v44  ;;  %v2438_v32 = vld [vmem:[%s2136_s12 + $0x98] sm:$0xff] }
  0x72   : > { %v577_v6 = vadd.f32 %v576_v51, %v546_v48  ;;  %v518_v34 = vadd.f32 %v517_v20, %v2404_v16  ;;  %3364 = vst [vmem:[#allocation49_spill] sm:$0xff] %v2438_v32  ;;  %v724_v43 = vadd.f32 %v723_v10, %v693_v41  ;;  %v2442_v20 = vld [vmem:[%s2120_s20 + $0xc8] sm:$0xff]  ;;  %v696_v1 = vmul.f32 %v2328_v60, %v2420_v14  ;;  %v2456_v41 = vld [vmem:[%s2136_s12 + $0xa0] sm:$0xff] }
  0x73   : > { %v661_v37 = vadd.f32 %v660_v0, %v2376_v23  ;;  %v548_v0 = vmul.f32 %v2260_v57, %v2260_v57  ;;  %v695_v57 = vmul.f32 %v2312_v46, %v2404_v16  ;;  %v861_v48 = vadd.f32 %v860_v27, %v2412_v25  ;;  %3366 = vst [vmem:[#allocation51_spill] sm:$0xff] %v2456_v41  ;;  %v2464_v60 = vld [vmem:[%s2128_s8 + $0x88] sm:$0xff] }
  0x74   : > { %v578_v51 = vadd.f32 %v577_v6, %v547_v21  ;;  %v519_v58 = vadd.f32 %v518_v34, %v2420_v14  ;;  %v725_v10 = vadd.f32 %v724_v43, %v694_v49  ;;  %v2460_v34 = vld [vmem:[%s2120_s20 + $0xd0] sm:$0xff]  ;;  %3367 = vst [vmem:[#allocation52_spill] sm:$0xff] %v2464_v60  ;;  %v2474_v49 = vld [vmem:[%s2136_s12 + $0xa8] sm:$0xff] }
  0x75   : > { %v662_v62 = vadd.f32 %v661_v37, %v2392_v35  ;;  %v549_v37 = vmul.f32 %v2274_v4, %v2274_v4  ;;  %v748_v4 = vmul.f32 %v2147_v2, %v2147_v2  ;;  %v862_v21 = vadd.f32 %v861_v48, %v2428_v44  ;;  %3368 = vst [vmem:[#allocation53_spill] sm:$0xff] %v2474_v49 }
  0x76   : > { %v579_v6 = vadd.f32 %v578_v51, %v548_v0  ;;  %v520_v25 = vadd.f32 %v519_v58, %v2438_v32  ;;  %v697_v2 = vmul.f32 %v2344_v26, %v2438_v32  ;;  %v726_v58 = vadd.f32 %v725_v10, %v695_v57  ;;  %v2478_v51 = vld [vmem:[%s2120_s20 + $0xd8] sm:$0xff]  ;;  %v2482_v26 = vld [vmem:[%s2128_s8 + $0x90] sm:$0xff]  ;;  %v2494_v10 = vld [vmem:[%s2120_s20 + $0xe0] sm:$0xff] }
  0x77   : > { %v663_v42 = vadd.f32 %v662_v62, %v2408_v59  ;;  %v550_v62 = vmul.f32 %v2288_v22, %v2288_v22  ;;  %v749_v22 = vmul.f32 %v2150_v3, %v2150_v3  ;;  %v863_v0 = vadd.f32 %v862_v21, %v2446_v31  ;;  %3369 = vst [vmem:[#allocation54_spill] sm:$0xff] %v2482_v26  ;;  %v2490_v21 = vld [vmem:[%s2136_s12 + $0xb0] sm:$0xff]  ;;  %v2498_v31 = vld [vmem:[%s2128_s8 + $0x98] sm:$0xff] }
  0x78   : > { %v580_v43 = vadd.f32 %v579_v6, %v549_v37  ;;  %v521_v44 = vadd.f32 %v520_v25, %v2456_v41  ;;  %v698_v3 = vmul.f32 %v2360_v56, %v2456_v41  ;;  %v727_v37 = vadd.f32 %v726_v58, %v696_v1  ;;  %3370 = vst [vmem:[#allocation55_spill] sm:$0xff] %v2498_v31  ;;  %v2508_v1 = vld [vmem:[%s2136_s12 + $0xb8] sm:$0xff] }
  0x79   : > { %v664_v27 = vadd.f32 %v663_v42, %v2424_v8  ;;  %v551_v42 = vmul.f32 %v2306_v40, %v2306_v40  ;;  %v779_v40 = vadd.f32 %v748_v4, %v747_v30  ;;  %v864_v57 = vadd.f32 %v863_v0, %v2464_v60  ;;  %v2516_v60 = vld [vmem:[%s2128_s8 + $0xa0] sm:$0xff] }
  0x7a   : > { %v581_v25 = vadd.f32 %v580_v43, %v550_v62  ;;  %v522_v6 = vadd.f32 %v521_v44, %v2474_v49  ;;  %v699_v4 = vmul.f32 %v2376_v23, %v2474_v49  ;;  %v553_v30 = vmul.f32 %v2340_v15, %v2340_v15  ;;  %v2512_v43 = vld [vmem:[%s2120_s20 + $0xe8] sm:$0xff]  ;;  %3371 = vst [vmem:[#allocation56_spill] sm:$0xff] %v2516_v60 }
  0x7b   : > { %v665_v48 = vadd.f32 %v664_v27, %v2442_v20  ;;  %v552_v27 = vmul.f32 %v2322_v54, %v2322_v54  ;;  %v865_v62 = vadd.f32 %v864_v57, %v2482_v26  ;;  %v728_v44 = vadd.f32 %v727_v37, %v697_v2  ;;  %v2526_v2 = vld [vmem:[%s2136_s12 + $0xc0] sm:$0xff] }
  0x7c   : > { %v582_v58 = vadd.f32 %v581_v25, %v551_v42  ;;  %v523_v54 = vadd.f32 %v522_v6, %v2490_v21  ;;  %v555_v15 = vmul.f32 %v2372_v17, %v2372_v17  ;;  %3372 = vst [vmem:[#allocation57_spill] sm:$0xff] %v2526_v2  ;;  %v2530_v6 = vld [vmem:[%s2120_s20 + $0xf0] sm:$0xff]  ;;  %v701_v17 = vmul.f32 %v2408_v59, %v2508_v1 }
  0x7d   : > { %v666_v19 = vadd.f32 %v665_v48, %v2460_v34  ;;  %v750_v48 = vmul.f32 %v2155_v5, %v2155_v5  ;;  %v700_v5 = vmul.f32 %v2392_v35, %v2490_v21  ;;  %v866_v42 = vadd.f32 %v865_v62, %v2498_v31  ;;  %v2534_v35 = vld [vmem:[%s2128_s8 + $0xa8] sm:$0xff]  ;;  %v2552_v59 = vld [vmem:[%s2128_s8 + $0xb0] sm:$0xff] }
  0x7e   : > { %v729_v37 = vadd.f32 %v728_v44, %v698_v3  ;;  %v583_v25 = vadd.f32 %v582_v58, %v552_v27  ;;  %v524_v26 = vadd.f32 %v523_v54, %v2508_v1  ;;  %v2544_v3 = vld [vmem:[%s2136_s12 + $0xc8] sm:$0xff]  ;;  %v2548_v58 = vld [vmem:[%s2120_s20 + $0xf8] sm:$0xff] }
  0x7f   : > { %v667_v0 = vadd.f32 %v666_v19, %v2478_v51  ;;  %v554_v19 = vmul.f32 %v2356_v52, %v2356_v52  ;;  %v557_v52 = vmul.f32 %v2404_v16, %v2404_v16  ;;  %3373 = vst [vmem:[#allocation58_spill] sm:$0xff] %v2544_v3  ;;  %v867_v27 = vadd.f32 %v866_v42, %v2516_v60  ;;  %v2560_v42 = vld [vmem:[%s2136_s12 + $0xd0] sm:$0xff] }
  0x80   : > { %v730_v54 = vadd.f32 %v729_v37, %v699_v4  ;;  %v584_v44 = vadd.f32 %v583_v25, %v553_v30  ;;  %v525_v31 = vadd.f32 %v524_v26, %v2526_v2  ;;  %v780_v16 = vadd.f32 %v779_v40, %v749_v22  ;;  %3374 = vst [vmem:[#allocation59_spill] sm:$0xff] %v2560_v42  ;;  %v2565_v25 = vld [vmem:[%s2128_s8 + $0xb8] sm:$0xff] }
  0x81   : > { %v668_v57 = vadd.f32 %v667_v0, %v2494_v10  ;;  %v556_v0 = vmul.f32 %v2388_v50, %v2388_v50  ;;  %v702_v50 = vmul.f32 %v2424_v8, %v2526_v2  ;;  %v868_v4 = vadd.f32 %v867_v27, %v2534_v35 }
  0x82   : > { %v731_v30 = vadd.f32 %v730_v54, %v700_v5  ;;  %v585_v37 = vadd.f32 %v584_v44, %v554_v19  ;;  %v526_v26 = vadd.f32 %v525_v31, %v2544_v3  ;;  %v703_v60 = vmul.f32 %v2442_v20, %v2544_v3  ;;  %v2578_v54 = vld [vmem:[%s2128_s8 + $0xc0] sm:$0xff] }
  0x83   : > { %v669_v62 = vadd.f32 %v668_v57, %v2512_v43  ;;  %v751_v57 = vmul.f32 %v2159_v7, %v2159_v7  ;;  %v752_v7 = vmul.f32 %v2163_v9, %v2163_v9  ;;  %v781_v22 = vadd.f32 %v780_v16, %v750_v48 }
  0x84   : > { %v869_v5 = vadd.f32 %v868_v4, %v2552_v59  ;;  %v732_v19 = vadd.f32 %v731_v30, %v701_v17  ;;  %v586_v27 = vadd.f32 %v585_v37, %v555_v15  ;;  %v527_v31 = vadd.f32 %v526_v26, %v2560_v42  ;;  %v2592_v37 = vld [vmem:[%s2128_s8 + $0xc8] sm:$0xff] }
  0x85   : > { %v670_v23 = vadd.f32 %v669_v62, %v2530_v6  ;;  %v2573_v62 = vld [vmem:[%s2136_s12 + $0xd8] sm:$0xff]  ;;  %v558_v44 = vmul.f32 %v2420_v14, %v2420_v14  ;;  %v753_v9 = vmul.f32 %v2167_v11, %v2167_v11  ;;  %v782_v16 = vadd.f32 %v781_v22, %v751_v57  ;;  %v2599_v22 = vld [vmem:[%s2136_s12 + $0xe8] sm:$0xff] }
  0x86   : > { %3375 = vst [vmem:[#allocation60_spill] sm:$0xff] %v2573_v62  ;;  %v870_v48 = vadd.f32 %v869_v5, %v2565_v25  ;;  %v704_v17 = vmul.f32 %v2460_v34, %v2560_v42  ;;  %v733_v15 = vadd.f32 %v732_v19, %v702_v50  ;;  %v587_v4 = vadd.f32 %v586_v27, %v556_v0  ;;  %v2606_v27 = vld [vmem:[%s2128_s8 + $0xd0] sm:$0xff] }
  0x87   : > { %v671_v40 = vadd.f32 %v670_v23, %v2548_v58  ;;  %v2585_v23 = vld [vmem:[%s2136_s12 + $0xe0] sm:$0xff]  ;;  %v528_v30 = vadd.f32 %v527_v31, %v2573_v62  ;;  %v559_v11 = vmul.f32 %v2438_v32, %v2438_v32  ;;  %v754_v57 = vmul.f32 %v2171_v13, %v2171_v13  ;;  %3377 = vst [vmem:[#allocation62_spill] sm:$0xff] %v2599_v22 }
  0x88   : > { %3376 = vst [vmem:[#allocation61_spill] sm:$0xff] %v2585_v23  ;;  %v783_v26 = vadd.f32 %v782_v16, %v752_v7  ;;  %v705_v50 = vmul.f32 %v2478_v51, %v2573_v62  ;;  %v734_v0 = vadd.f32 %v733_v15, %v703_v60  ;;  %v588_v5 = vadd.f32 %v587_v4, %v557_v52  ;;  %v2613_v16 = vld [vmem:[%s2136_s12 + $0xf0] sm:$0xff] }
  0x89   : > { %672 = vadd.xlane.f32.xlu1 %v671_v40  ;;  %v871_v40 = vadd.f32 %v870_v48, %v2578_v54  ;;  %v529_v19 = vadd.f32 %v528_v30, %v2585_v23  ;;  %v560_v31 = vmul.f32 %v2456_v41, %v2456_v41  ;;  %v755_v13 = vmul.f32 %v2184_v18, %v2184_v18  ;;  %v2620_v30 = vld [vmem:[%s2128_s8 + $0xd8] sm:$0xff] }
  0x8a   : > { %v784_v7 = vadd.f32 %v783_v26, %v753_v9  ;;  %3378 = vst [vmem:[#allocation63_spill] sm:$0xff] %v2613_v16  ;;  %v706_v60 = vmul.f32 %v2494_v10, %v2585_v23  ;;  %v735_v52 = vadd.f32 %v734_v0, %v704_v17  ;;  %v589_v15 = vadd.f32 %v588_v5, %v558_v44  ;;  %v2627_v26 = vld [vmem:[%s2136_s12 + $0xf8] sm:$0xff] }
  0x8b   : > { %v872_v48 = vadd.f32 %v871_v40, %v2592_v37  ;;  %v530_v4 = vadd.f32 %v529_v19, %v2599_v22  ;;  %v561_v41 = vmul.f32 %v2474_v49, %v2474_v49  ;;  %v756_v18 = vmul.f32 %v2197_v24, %v2197_v24  ;;  %3379 = vst [vmem:[#allocation64_spill] sm:$0xff] %v2627_v26  ;;  %v2634_v19 = vld [vmem:[%s2128_s8 + $0xe0] sm:$0xff] }
  0x8c   : > { %v785_v9 = vadd.f32 %v784_v7, %v754_v57  ;;  %v707_v17 = vmul.f32 %v2512_v43, %v2599_v22  ;;  %v736_v44 = vadd.f32 %v735_v52, %v705_v50  ;;  %v590_v0 = vadd.f32 %v589_v15, %v559_v11  ;;  %v2645_v52 = vld [vmem:[%s2128_s8 + $0xe8] sm:$0xff] }
  0x8d   : > { %v873_v40 = vadd.f32 %v872_v48, %v2606_v27  ;;  %v531_v5 = vadd.f32 %v530_v4, %v2613_v16  ;;  %v562_v49 = vmul.f32 %v2490_v21, %v2490_v21  ;;  %v757_v24 = vmul.f32 %v2207_v29, %v2207_v29 }
  0x8e   : > { %v786_v57 = vadd.f32 %v785_v9, %v755_v13  ;;  %v708_v48 = vmul.f32 %v2530_v6, %v2613_v16  ;;  %v737_v32 = vadd.f32 %v736_v44, %v706_v60  ;;  %v591_v50 = vadd.f32 %v590_v0, %v560_v31  ;;  %v2655_v31 = vld [vmem:[%s2128_s8 + $0xf0] sm:$0xff] }
  0x8f   : > { %v874_v7 = vadd.f32 %v873_v40, %v2620_v30  ;;  %v532_v11 = vadd.f32 %v531_v5, %v2627_v26  ;;  %v563_v15 = vmul.f32 %v2508_v1, %v2508_v1  ;;  %v758_v4 = vmul.f32 %v2220_v36, %v2220_v36 }
  0x90   : > { %v787_v29 = vadd.f32 %v786_v57, %v756_v18  ;;  %v709_v9 = vmul.f32 %v2548_v58, %v2627_v26  ;;  %v738_v40 = vadd.f32 %v737_v32, %v707_v17  ;;  %v592_v60 = vadd.f32 %v591_v50, %v561_v41  ;;  %v2667_v17 = vld [vmem:[%s2128_s8 + $0xf8] sm:$0xff] }
  0x91   : > { %v875_v13 = vadd.f32 %v874_v7, %v2634_v19  ;;  %533 = vadd.xlane.f32.xlu0 %v532_v11  ;;  %v759_v44 = vmul.f32 %v2238_v45, %v2238_v45  ;;  %v954_v5 = vmul.f32 %v2215_v33, %v2215_v33  ;;  %v955_v36 = vmul.f32 %v2224_v38, %v2224_v38 }
  0x92   : > { %v788_v0 = vadd.f32 %v787_v29, %v757_v24  ;;  %v739_v57 = vadd.f32 %v738_v40, %v708_v48  ;;  %v564_v32 = vmul.f32 %v2526_v2, %v2526_v2  ;;  %v593_v41 = vadd.f32 %v592_v60, %v562_v49  ;;  %v3412_v2 = vld [vmem:[#allocation31_spill] sm:$0xff] }
  0x93   : > { %v876_v18 = vadd.f32 %v875_v13, %v2645_v52  ;;  %v760_v7 = vmul.f32 %v2252_v53, %v2252_v53  ;;  %v956_v24 = vmul.f32 %v2227_v39, %v2227_v39  ;;  %v565_v29 = vmul.f32 %v2544_v3, %v2544_v3 }
  0x94   : > { %v789_v45 = vadd.f32 %v788_v0, %v758_v4  ;;  %v740_v11 = vadd.f32 %v739_v57, %v709_v9  ;;  %v594_v48 = vadd.f32 %v593_v41, %v563_v15  ;;  %v761_v13 = vmul.f32 %v2266_v61, %v2266_v61 }
  0x95   : > { %v877_v50 = vadd.f32 %v876_v18, %v2655_v31  ;;  %v957_v40 = vmul.f32 %v2242_v47, %v2242_v47  ;;  %v986_v60 = vadd.f32 %v955_v36, %v954_v5  ;;  %v566_v4 = vmul.f32 %v2560_v42, %v2560_v42  ;;  %v3410_v42 = vld [vmem:[#allocation29_spill] sm:$0xff] }
  0x96   : > { %v790_v49 = vadd.f32 %v789_v45, %v759_v44  ;;  %741 = vadd.xlane.f32.xlu1 %v740_v11  ;;  %v595_v0 = vadd.f32 %v594_v48, %v564_v32  ;;  %v762_v9 = vmul.f32 %v2280_v12, %v2280_v12  ;;  %v958_v15 = vmul.f32 %v2256_v55, %v2256_v55 }
  0x97   : > { %v878_v53 = vadd.f32 %v877_v50, %v2667_v17  ;;  %v987_v61 = vadd.f32 %v986_v60, %v956_v24  ;;  %v567_v44 = vmul.f32 %v2573_v62, %v2573_v62  ;;  %v763_v36 = vmul.f32 %v2294_v28, %v2294_v28  ;;  %v3380_v50 = vld [vmem:[#allocation26_spill] sm:$0xff] }
  0x98   : > { %v791_v18 = vadd.f32 %v790_v49, %v760_v7  ;;  %v596_v5 = vadd.f32 %v595_v0, %v565_v29  ;;  %v959_v32 = vmul.f32 %v2270_v63, %v2270_v63  ;;  %v568_v12 = vmul.f32 %v2585_v23, %v2585_v23 }
  0x99   : > { %879 = vadd.xlane.f32.xlu2 %v878_v53  ;;  %v988_v41 = vadd.f32 %v987_v61, %v957_v40  ;;  %v764_v45 = vmul.f32 %v2312_v46, %v2312_v46  ;;  %v960_v11 = vmul.f32 %v3380_v50, %v3380_v50  ;;  %v569_v28 = vmul.f32 %v2599_v22, %v2599_v22  ;;  %v3381_v40 = vld [vmem:[#allocation32_spill] sm:$0xff]  ;;  %v2754_v22 = vld [vmem:[%s2134_s10 + $0x18] sm:$0xff] }
  0x9a   : > { %v792_v57 = vadd.f32 %v791_v18, %v761_v13  ;;  %v597_v7 = vadd.f32 %v596_v5, %v566_v4  ;;  %v570_v48 = vmul.f32 %v2613_v16, %v2613_v16  ;;  %v571_v13 = vmul.f32 %v2627_v26, %v2627_v26  ;;  %v3382_v46 = vld [vmem:[#allocation28_spill] sm:$0xff]  ;;  %v3383_v18 = vld [vmem:[#allocation35_spill] sm:$0xff]  ;;  %v3389_v26 = vld [vmem:[#allocation18_spill] sm:$0xff] }
  0x9b   : > { %v989_v29 = vadd.f32 %v988_v41, %v958_v15  ;;  %v765_v60 = vmul.f32 %v3381_v40, %v3381_v40  ;;  %v961_v4 = vmul.f32 %v3382_v46, %v3382_v46  ;;  %v766_v15 = vmul.f32 %v3383_v18, %v3383_v18  ;;  %v3384_v61 = vld [vmem:[#allocation16_spill] sm:$0xff]  ;;  %v3388_v40 = vld [vmem:[#allocation43_spill] sm:$0xff] }
  0x9c   : > { %v793_v24 = vadd.f32 %v792_v57, %v762_v9  ;;  %v598_v49 = vadd.f32 %v597_v7, %v567_v44  ;;  %v885_v5 = vmul.f32 %v2215_v33, %v3384_v61  ;;  %v3385_v57 = vld [vmem:[#allocation17_spill] sm:$0xff]  ;;  %v767_v41 = vmul.f32 %v2360_v56, %v2360_v56  ;;  %v3386_v7 = vld [vmem:[#allocation30_spill] sm:$0xff] }
  0x9d   : > { %v990_v0 = vadd.f32 %v989_v29, %v959_v32  ;;  %v886_v44 = vmul.f32 %v2224_v38, %v3385_v57  ;;  %v3387_v29 = vld [vmem:[#allocation40_spill] sm:$0xff]  ;;  %v769_v18 = vmul.f32 %v3388_v40, %v3388_v40  ;;  %v887_v33 = vmul.f32 %v2227_v39, %v3389_v26  ;;  %v3390_v38 = vld [vmem:[#allocation46_spill] sm:$0xff] }
  0x9e   : > { %v794_v53 = vadd.f32 %v793_v24, %v763_v36  ;;  %v599_v9 = vadd.f32 %v598_v49, %v568_v12  ;;  %v962_v24 = vmul.f32 %v3386_v7, %v3386_v7  ;;  %v768_v49 = vmul.f32 %v3387_v29, %v3387_v29 }
  0x9f   : > { %v991_v32 = vadd.f32 %v990_v0, %v960_v11  ;;  %v770_v61 = vmul.f32 %v3390_v38, %v3390_v38  ;;  %v2730_v11 = vld [vmem:[%s2134_s10] sm:$0xff]  ;;  %v917_v40 = vadd.f32 %v886_v44, %v885_v5  ;;  %v771_v26 = vmul.f32 %v2424_v8, %v2424_v8  ;;  %v2744_v38 = vld [vmem:[%s2134_s10 + $0x10] sm:$0xff] }
  0xa0   : > { %v795_v36 = vadd.f32 %v794_v53, %v764_v45  ;;  %v600_v12 = vadd.f32 %v599_v9, %v569_v28  ;;  %v3391_v45 = vld [vmem:[#allocation33_spill] sm:$0xff]  ;;  %v3392_v9 = vld [vmem:[#allocation19_spill] sm:$0xff]  ;;  %v772_v44 = vmul.f32 %v2442_v20, %v2442_v20  ;;  %v3395_v8 = vld [vmem:[#allocation38_spill] sm:$0xff]  ;;  %v774_v20 = vmul.f32 %v2478_v51, %v2478_v51 }
  0xa1   : > { %v963_v53 = vmul.f32 %v3391_v45, %v3391_v45  ;;  %v992_v57 = vadd.f32 %v991_v32, %v961_v4  ;;  %v2733_v28 = vld [vmem:[%s2134_s10 + $0x8] sm:$0xff]  ;;  %v888_v29 = vmul.f32 %v2242_v47, %v3392_v9  ;;  %v918_v47 = vadd.f32 %v917_v40, %v887_v33 }
  0xa2   : > { %v796_v56 = vadd.f32 %v795_v36, %v765_v60  ;;  %v601_v0 = vadd.f32 %v600_v12, %v570_v48  ;;  %v1055_v39 = vadd.f32 %v2733_v28, %v2730_v11  ;;  %v3393_v36 = vld [vmem:[#allocation36_spill] sm:$0xff]  ;;  %v2775_v51 = vmul.f32 %v2512_v43, %v2512_v43 }
  0xa3   : > { %v964_v4 = vmul.f32 %v3393_v36, %v3393_v36  ;;  %v993_v32 = vadd.f32 %v992_v57, %v962_v24  ;;  %v3394_v48 = vld [vmem:[#allocation20_spill] sm:$0xff]  ;;  %v3396_v24 = vld [vmem:[#allocation21_spill] sm:$0xff]  ;;  %v919_v33 = vadd.f32 %v918_v47, %v888_v29  ;;  %v2791_v43 = vmul.f32 %v2548_v58, %v2548_v58  ;;  %v3404_v58 = vld [vmem:[#allocation50_spill] sm:$0xff] }
  0xa4   : > { %v797_v60 = vadd.f32 %v796_v56, %v766_v15  ;;  %v602_v16 = vadd.f32 %v601_v0, %v571_v13  ;;  %v889_v12 = vmul.f32 %v2256_v55, %v3394_v48  ;;  %v1056_v5 = vadd.f32 %v1055_v39, %v2744_v38  ;;  %v3397_v0 = vld [vmem:[#allocation41_spill] sm:$0xff]  ;;  %v2766_v39 = vld [vmem:[%s2134_s10 + $0x20] sm:$0xff] }
  0xa5   : > { %v965_v15 = vmul.f32 %v3395_v8, %v3395_v8  ;;  %v994_v56 = vadd.f32 %v993_v32, %v963_v53  ;;  %v773_v13 = vmul.f32 %v2460_v34, %v2460_v34  ;;  %v890_v55 = vmul.f32 %v2270_v63, %v3396_v24  ;;  %v3399_v32 = vld [vmem:[#allocation44_spill] sm:$0xff]  ;;  %v2780_v47 = vld [vmem:[%s2134_s10 + $0x28] sm:$0xff] }
  0xa6   : > { %v798_v9 = vadd.f32 %v797_v60, %v767_v41  ;;  %603 = vadd.xlane.f32.xlu0 %v602_v16  ;;  %v1057_v57 = vadd.f32 %v1056_v5, %v2754_v22  ;;  %v966_v53 = vmul.f32 %v3397_v0, %v3397_v0  ;;  %v775_v34 = vmul.f32 %v2494_v10, %v2494_v10  ;;  %v3398_v16 = vld [vmem:[#allocation22_spill] sm:$0xff] }
  0xa7   : > { %v995_v40 = vadd.f32 %v994_v56, %v964_v4  ;;  %v891_v63 = vmul.f32 %v3380_v50, %v3398_v16  ;;  %v920_v29 = vadd.f32 %v919_v33, %v889_v12  ;;  %v967_v4 = vmul.f32 %v3399_v32, %v3399_v32  ;;  %v3400_v50 = vld [vmem:[#allocation23_spill] sm:$0xff]  ;;  %v2796_v33 = vld [vmem:[%s2134_s10 + $0x30] sm:$0xff] }
  0xa8   : > { %v799_v41 = vadd.f32 %v798_v9, %v768_v49  ;;  %v1058_v60 = vadd.f32 %v1057_v57, %v2766_v39  ;;  %v2784_v10 = vmul.f32 %v2530_v6, %v2530_v6  ;;  %v892_v12 = vmul.f32 %v3382_v46, %v3400_v50  ;;  %v3401_v56 = vld [vmem:[#allocation47_spill] sm:$0xff]  ;;  %v3402_v6 = vld [vmem:[#allocation48_spill] sm:$0xff] }
  0xa9   : > { %v996_v48 = vadd.f32 %v995_v40, %v965_v15  ;;  %v921_v5 = vadd.f32 %v920_v29, %v890_v55  ;;  %v968_v15 = vmul.f32 %v3401_v56, %v3401_v56  ;;  %v969_v57 = vmul.f32 %v3402_v6, %v3402_v6 }
  0xaa   : > { %v800_v49 = vadd.f32 %v799_v41, %v769_v18  ;;  %v1059_v9 = vadd.f32 %v1058_v60, %v2780_v47  ;;  %v3403_v41 = vld [vmem:[#allocation24_spill] sm:$0xff]  ;;  %v3405_v60 = vld [vmem:[#allocation25_spill] sm:$0xff] }
  0xab   : > { %v997_v24 = vadd.f32 %v996_v48, %v966_v53  ;;  %v893_v46 = vmul.f32 %v3386_v7, %v3403_v41  ;;  %v922_v55 = vadd.f32 %v921_v5, %v891_v63  ;;  %v894_v53 = vmul.f32 %v3391_v45, %v3405_v60  ;;  %v3406_v5 = vld [vmem:[#allocation52_spill] sm:$0xff] }
  0xac   : > { %v801_v18 = vadd.f32 %v800_v49, %v770_v61  ;;  %v1060_v40 = vadd.f32 %v1059_v9, %v2796_v33  ;;  %v970_v61 = vmul.f32 %v3404_v58, %v3404_v58  ;;  %v2808_v49 = vld [vmem:[%s2134_s10 + $0x38] sm:$0xff]  ;;  %v1161_v7 = vmul.f32 %v2730_v11, %v2730_v11 }
  0xad   : > { %v998_v29 = vadd.f32 %v997_v24, %v967_v4  ;;  %v923_v48 = vadd.f32 %v922_v55, %v892_v12  ;;  %v1162_v63 = vmul.f32 %v2733_v28, %v2733_v28  ;;  %v971_v9 = vmul.f32 %v3406_v5, %v3406_v5  ;;  %v3407_v4 = vld [vmem:[#allocation54_spill] sm:$0xff]  ;;  %v2820_v24 = vld [vmem:[%s2134_s10 + $0x40] sm:$0xff]  ;;  %v3408_v12 = vld [vmem:[#allocation27_spill] sm:$0xff] }
  0xae   : > { %v802_v16 = vadd.f32 %v801_v18, %v771_v26  ;;  %v1061_v50 = vadd.f32 %v1060_v40, %v2808_v49  ;;  %v972_v18 = vmul.f32 %v3407_v4, %v3407_v4  ;;  %v895_v41 = vmul.f32 %v3393_v36, %v3408_v12  ;;  %v3411_v12 = vld [vmem:[#allocation56_spill] sm:$0xff] }
  0xaf   : > { %v999_v45 = vadd.f32 %v998_v29, %v968_v15  ;;  %v924_v55 = vadd.f32 %v923_v48, %v893_v46  ;;  %v1163_v60 = vmul.f32 %v2744_v38, %v2744_v38  ;;  %v896_v15 = vmul.f32 %v3395_v8, %v3410_v42  ;;  %v2832_v29 = vld [vmem:[%s2134_s10 + $0x48] sm:$0xff] }
  0xb0   : > { %v803_v26 = vadd.f32 %v802_v16, %v772_v44  ;;  %v1062_v40 = vadd.f32 %v1061_v50, %v2820_v24  ;;  %v3409_v16 = vld [vmem:[#allocation55_spill] sm:$0xff]  ;;  %v1164_v46 = vmul.f32 %v2754_v22, %v2754_v22  ;;  %v1193_v48 = vadd.f32 %v1162_v63, %v1161_v7  ;;  %v3413_v63 = vld [vmem:[#allocation34_spill] sm:$0xff] }
  0xb1   : > { %v973_v23 = vmul.f32 %v3409_v16, %v3409_v16  ;;  %v1000_v62 = vadd.f32 %v999_v45, %v969_v57  ;;  %v925_v3 = vadd.f32 %v924_v55, %v894_v53  ;;  %v897_v57 = vmul.f32 %v3397_v0, %v3412_v2  ;;  %v2842_v45 = vld [vmem:[%s2134_s10 + $0x50] sm:$0xff] }
  0xb2   : > { %v804_v44 = vadd.f32 %v803_v26, %v773_v13  ;;  %v1063_v36 = vadd.f32 %v1062_v40, %v2832_v29  ;;  %v974_v13 = vmul.f32 %v3411_v12, %v3411_v12  ;;  %v1165_v53 = vmul.f32 %v2766_v39, %v2766_v39 }
  0xb3   : > { %v1001_v26 = vadd.f32 %v1000_v62, %v970_v61  ;;  %v926_v42 = vadd.f32 %v925_v3, %v895_v41  ;;  %v1194_v55 = vadd.f32 %v1193_v48, %v1163_v60  ;;  %v898_v62 = vmul.f32 %v3399_v32, %v3413_v63  ;;  %v2852_v61 = vld [vmem:[%s2134_s10 + $0x58] sm:$0xff]  ;;  %v2863_v32 = vld [vmem:[%s2134_s10 + $0x60] sm:$0xff] }
  0xb4   : > { %v805_v50 = vadd.f32 %v804_v44, %v774_v20  ;;  %v1064_v8 = vadd.f32 %v1063_v36, %v2842_v45  ;;  %v975_v20 = vmul.f32 %v2534_v35, %v2534_v35  ;;  %v1166_v0 = vmul.f32 %v2780_v47, %v2780_v47 }
  0xb5   : > { %v1002_v7 = vadd.f32 %v1001_v26, %v971_v9  ;;  %v927_v2 = vadd.f32 %v926_v42, %v896_v15  ;;  %v1195_v41 = vadd.f32 %v1194_v55, %v1164_v46  ;;  %v3414_v9 = vld [vmem:[#allocation37_spill] sm:$0xff] }
  0xb6   : > { %v806_v40 = vadd.f32 %v805_v50, %v775_v34  ;;  %v1065_v3 = vadd.f32 %v1064_v8, %v2852_v61  ;;  %v976_v34 = vmul.f32 %v2552_v59, %v2552_v59  ;;  %v899_v36 = vmul.f32 %v3401_v56, %v3414_v9  ;;  %v2874_v56 = vld [vmem:[%s2134_s10 + $0x68] sm:$0xff]  ;;  %v2897_v9 = vld [vmem:[%s2134_s10 + $0x78] sm:$0xff] }
  0xb7   : > { %v1003_v44 = vadd.f32 %v1002_v7, %v972_v18  ;;  %v928_v48 = vadd.f32 %v927_v2, %v897_v57  ;;  %v1167_v50 = vmul.f32 %v2796_v33, %v2796_v33  ;;  %v1196_v26 = vadd.f32 %v1195_v41, %v1165_v53  ;;  %v3415_v18 = vld [vmem:[#allocation39_spill] sm:$0xff] }
  0xb8   : > { %v807_v60 = vadd.f32 %v806_v40, %v2775_v51  ;;  %v1066_v15 = vadd.f32 %v1065_v3, %v2863_v32  ;;  %v977_v51 = vmul.f32 %v2565_v25, %v2565_v25  ;;  %v900_v8 = vmul.f32 %v3402_v6, %v3415_v18  ;;  %v2885_v6 = vld [vmem:[%s2134_s10 + $0x70] sm:$0xff] }
  0xb9   : > { %v1004_v42 = vadd.f32 %v1003_v44, %v973_v23  ;;  %v929_v55 = vadd.f32 %v928_v48, %v898_v62  ;;  %v1168_v40 = vmul.f32 %v2808_v49, %v2808_v49  ;;  %v1197_v7 = vadd.f32 %v1196_v26, %v1166_v0  ;;  %v3416_v23 = vld [vmem:[#allocation42_spill] sm:$0xff]  ;;  %v3417_v44 = vld [vmem:[#allocation45_spill] sm:$0xff] }
  0xba   : > { %v808_v46 = vadd.f32 %v807_v60, %v2784_v10  ;;  %v1067_v57 = vadd.f32 %v1066_v15, %v2874_v56  ;;  %v978_v10 = vmul.f32 %v2578_v54, %v2578_v54  ;;  %v901_v2 = vmul.f32 %v3404_v58, %v3416_v23 }
  0xbb   : > { %v1005_v63 = vadd.f32 %v1004_v42, %v974_v13  ;;  %v930_v3 = vadd.f32 %v929_v55, %v899_v36  ;;  %v1169_v41 = vmul.f32 %v2820_v24, %v2820_v24  ;;  %v1198_v60 = vadd.f32 %v1197_v7, %v1167_v50  ;;  %v2909_v42 = vld [vmem:[%s2134_s10 + $0x80] sm:$0xff] }
  0xbc   : > { %v809_v53 = vadd.f32 %v808_v46, %v2791_v43  ;;  %v1068_v62 = vadd.f32 %v1067_v57, %v2885_v6  ;;  %v979_v43 = vmul.f32 %v2592_v37, %v2592_v37  ;;  %v980_v13 = vmul.f32 %v2606_v27, %v2606_v27 }
  0xbd   : > { %v1006_v0 = vadd.f32 %v1005_v63, %v975_v20  ;;  %v902_v58 = vmul.f32 %v3406_v5, %v3417_v44  ;;  %v931_v36 = vadd.f32 %v930_v3, %v900_v8  ;;  %v1170_v15 = vmul.f32 %v2832_v29, %v2832_v29  ;;  %v1752_v44 = vld [vmem:[%s2136_s12 + $0x8] sm:$0xff] }
  0xbe   : > { %810 = vadd.xlane.f32.xlu2 %v809_v53  ;;  %v1069_v48 = vadd.f32 %v1068_v62, %v2897_v9  ;;  %v1199_v50 = vadd.f32 %v1198_v60, %v1168_v40  ;;  %v981_v26 = vmul.f32 %v2620_v30, %v2620_v30  ;;  %v982_v46 = vmul.f32 %v2634_v19, %v2634_v19  ;;  %v2923_v53 = vld [vmem:[%s2134_s10 + $0x88] sm:$0xff] }
  0xbf   : > { %v1007_v20 = vadd.f32 %v1006_v0, %v976_v34  ;;  %v903_v5 = vmul.f32 %v3407_v4, %v2420_v14  ;;  %v932_v18 = vadd.f32 %v931_v36, %v901_v2  ;;  %v1171_v55 = vmul.f32 %v2842_v45, %v2842_v45  ;;  %v3418_v4 = vld [vmem:[#allocation49_spill] sm:$0xff]  ;;  %v2931_v0 = vld [vmem:[%s2134_s10 + $0x90] sm:$0xff] }
  0xc0   : > { %v1070_v8 = vadd.f32 %v1069_v48, %v2909_v42  ;;  %v1200_v57 = vadd.f32 %v1199_v50, %v1169_v41  ;;  %v983_v40 = vmul.f32 %v2645_v52, %v2645_v52  ;;  %v2918_v34 = vmul.f32 %v2655_v31, %v2655_v31  ;;  %v3419_v41 = vld [vmem:[#allocation51_spill] sm:$0xff] }
  0xc1   : > { %v1008_v14 = vadd.f32 %v1007_v20, %v977_v51  ;;  %v904_v7 = vmul.f32 %v3409_v16, %v3418_v4  ;;  %v933_v63 = vadd.f32 %v932_v18, %v902_v58  ;;  %v1172_v2 = vmul.f32 %v2852_v61, %v2852_v61  ;;  %v1751_v51 = vld [vmem:[%s2136_s12] sm:$0xff]  ;;  %v3420_v20 = vld [vmem:[#allocation53_spill] sm:$0xff] }
  0xc2   : > { %v1071_v23 = vadd.f32 %v1070_v8, %v2923_v53  ;;  %v1201_v3 = vadd.f32 %v1200_v57, %v1170_v15  ;;  %v905_v60 = vmul.f32 %v3411_v12, %v3419_v41  ;;  %v1092_v16 = vmul.f32 %v1751_v51, %v2730_v11  ;;  %v2945_v11 = vld [vmem:[%s2134_s10 + $0x98] sm:$0xff]  ;;  %v1753_v8 = vld [vmem:[%s2136_s12 + $0x10] sm:$0xff] }
  0xc3   : > { %v1009_v62 = vadd.f32 %v1008_v14, %v978_v10  ;;  %v1093_v58 = vmul.f32 %v1752_v44, %v2733_v28  ;;  %v934_v36 = vadd.f32 %v933_v63, %v903_v5  ;;  %v1173_v15 = vmul.f32 %v2863_v32, %v2863_v32 }
  0xc4   : > { %v1072_v48 = vadd.f32 %v1071_v23, %v2931_v0  ;;  %v1202_v10 = vadd.f32 %v1201_v3, %v1171_v55  ;;  %v985_v12 = vmul.f32 %v2667_v17, %v2667_v17  ;;  %v906_v18 = vmul.f32 %v2534_v35, %v3420_v20  ;;  %v2955_v23 = vld [vmem:[%s2134_s10 + $0xa0] sm:$0xff]  ;;  %v1754_v35 = vld [vmem:[%s2136_s12 + $0x18] sm:$0xff] }
  0xc5   : > { %v1010_v50 = vadd.f32 %v1009_v62, %v979_v43  ;;  %v1094_v28 = vmul.f32 %v1753_v8, %v2744_v38  ;;  %v935_v5 = vadd.f32 %v934_v36, %v904_v7  ;;  %v1174_v55 = vmul.f32 %v2874_v56, %v2874_v56  ;;  %v1755_v36 = vld [vmem:[%s2136_s12 + $0x20] sm:$0xff]  ;;  %v1756_v8 = vld [vmem:[%s2136_s12 + $0x28] sm:$0xff] }
  0xc6   : > { %v1073_v57 = vadd.f32 %v1072_v48, %v2945_v11  ;;  %v1203_v14 = vadd.f32 %v1202_v10, %v1172_v2  ;;  %v907_v43 = vmul.f32 %v2552_v59, %v2490_v21  ;;  %v1095_v3 = vmul.f32 %v1754_v35, %v2754_v22  ;;  %v2965_v59 = vld [vmem:[%s2134_s10 + $0xa8] sm:$0xff]  ;;  %v1757_v35 = vld [vmem:[%s2136_s12 + $0x30] sm:$0xff] }
  0xc7   : > { %v1011_v63 = vadd.f32 %v1010_v50, %v980_v13  ;;  %v1124_v62 = vadd.f32 %v1093_v58, %v1092_v16  ;;  %v936_v38 = vadd.f32 %v935_v5, %v905_v60  ;;  %v1175_v51 = vmul.f32 %v2885_v6, %v2885_v6 }
  0xc8   : > { %v1074_v7 = vadd.f32 %v1073_v57, %v2955_v23  ;;  %v1204_v44 = vadd.f32 %v1203_v14, %v1173_v15  ;;  %v908_v13 = vmul.f32 %v2565_v25, %v2508_v1  ;;  %v1096_v48 = vmul.f32 %v1755_v36, %v2766_v39  ;;  %v2975_v25 = vld [vmem:[%s2134_s10 + $0xb0] sm:$0xff] }
  0xc9   : > { %v1012_v2 = vadd.f32 %v1011_v63, %v981_v26  ;;  %v1125_v22 = vadd.f32 %v1124_v62, %v1094_v28  ;;  %v937_v16 = vadd.f32 %v936_v38, %v906_v18  ;;  %v1176_v58 = vmul.f32 %v2897_v9, %v2897_v9  ;;  %v3421_v26 = vld [vmem:[#allocation57_spill] sm:$0xff] }
  0xca   : > { %v1075_v60 = vadd.f32 %v1074_v7, %v2965_v59  ;;  %v1205_v10 = vadd.f32 %v1204_v44, %v1174_v55  ;;  %v909_v50 = vmul.f32 %v2578_v54, %v3421_v26  ;;  %v1097_v5 = vmul.f32 %v1756_v8, %v2780_v47  ;;  %v2985_v54 = vld [vmem:[%s2134_s10 + $0xb8] sm:$0xff]  ;;  %v2996_v44 = vld [vmem:[%s2134_s10 + $0xc0] sm:$0xff] }
  0xcb   : > { %v1013_v15 = vadd.f32 %v1012_v2, %v982_v46  ;;  %v1126_v39 = vadd.f32 %v1125_v22, %v1095_v3  ;;  %v938_v28 = vadd.f32 %v937_v16, %v907_v43  ;;  %v1177_v57 = vmul.f32 %v2909_v42, %v2909_v42  ;;  %v3422_v46 = vld [vmem:[#allocation58_spill] sm:$0xff]  ;;  %v1758_v2 = vld [vmem:[%s2136_s12 + $0x38] sm:$0xff] }
  0xcc   : > { %v1076_v18 = vadd.f32 %v1075_v60, %v2975_v25  ;;  %v1206_v14 = vadd.f32 %v1205_v10, %v1175_v51  ;;  %v910_v63 = vmul.f32 %v2592_v37, %v3422_v46  ;;  %v1098_v62 = vmul.f32 %v1757_v35, %v2796_v33  ;;  %v3423_v51 = vld [vmem:[#allocation59_spill] sm:$0xff]  ;;  %v1759_v10 = vld [vmem:[%s2136_s12 + $0x40] sm:$0xff] }
  0xcd   : > { %v1014_v55 = vadd.f32 %v1013_v15, %v983_v40  ;;  %v1127_v47 = vadd.f32 %v1126_v39, %v1096_v48  ;;  %v939_v3 = vadd.f32 %v938_v28, %v908_v13  ;;  %v1178_v38 = vmul.f32 %v2923_v53, %v2923_v53 }
  0xce   : > { %v1077_v43 = vadd.f32 %v1076_v18, %v2985_v54  ;;  %v1207_v7 = vadd.f32 %v1206_v14, %v1176_v58  ;;  %v911_v37 = vmul.f32 %v2606_v27, %v3423_v51  ;;  %v1099_v33 = vmul.f32 %v1758_v2, %v2808_v49  ;;  %v3006_v27 = vld [vmem:[%s2134_s10 + $0xc8] sm:$0xff]  ;;  %v3427_v2 = vld [vmem:[#allocation63_spill] sm:$0xff] }
  0xcf   : > { %v1015_v40 = vadd.f32 %v1014_v55, %v2918_v34  ;;  %v1128_v36 = vadd.f32 %v1127_v47, %v1097_v5  ;;  %v940_v13 = vadd.f32 %v939_v3, %v909_v50  ;;  %v1179_v22 = vmul.f32 %v2931_v0, %v2931_v0  ;;  %v3424_v34 = vld [vmem:[#allocation60_spill] sm:$0xff]  ;;  %v1760_v18 = vld [vmem:[%s2136_s12 + $0x48] sm:$0xff]  ;;  %v3026_v3 = vld [vmem:[%s2134_s10 + $0xd8] sm:$0xff] }
  0xd0   : > { %v1078_v48 = vadd.f32 %v1077_v43, %v2996_v44  ;;  %v1208_v16 = vadd.f32 %v1207_v7, %v1177_v57  ;;  %v912_v58 = vmul.f32 %v2620_v30, %v3424_v34  ;;  %v1100_v15 = vmul.f32 %v1759_v10, %v2820_v24  ;;  %v3016_v30 = vld [vmem:[%s2134_s10 + $0xd0] sm:$0xff] }
  0xd1   : > { %v1016_v60 = vadd.f32 %v1015_v40, %v985_v12  ;;  %v1129_v49 = vadd.f32 %v1128_v36, %v1098_v62  ;;  %v941_v50 = vadd.f32 %v940_v13, %v910_v63  ;;  %v1180_v5 = vmul.f32 %v2945_v11, %v2945_v11  ;;  %v3425_v12 = vld [vmem:[#allocation61_spill] sm:$0xff]  ;;  %v3426_v62 = vld [vmem:[#allocation62_spill] sm:$0xff]  ;;  %v3036_v36 = vld [vmem:[%s2134_s10 + $0xe0] sm:$0xff] }
  0xd2   : > { %v1079_v8 = vadd.f32 %v1078_v48, %v3006_v27  ;;  %v1209_v39 = vadd.f32 %v1208_v16, %v1178_v38  ;;  %v913_v28 = vmul.f32 %v2634_v19, %v3425_v12  ;;  %v1101_v57 = vmul.f32 %v1760_v18, %v2832_v29  ;;  %v1761_v19 = vld [vmem:[%s2136_s12 + $0x50] sm:$0xff]  ;;  %v1764_v18 = vld [vmem:[%s2136_s12 + $0x68] sm:$0xff] }
  0xd3   : > { %1017 = vadd.xlane.f32.xlu1 %v1016_v60  ;;  %v1130_v24 = vadd.f32 %v1129_v49, %v1099_v33  ;;  %v942_v14 = vadd.f32 %v941_v50, %v911_v37  ;;  %v1181_v63 = vmul.f32 %v2955_v23, %v2955_v23  ;;  %v914_v47 = vmul.f32 %v2645_v52, %v3426_v62  ;;  %v1762_v52 = vld [vmem:[%s2136_s12 + $0x58] sm:$0xff] }
  0xd4   : > { %v1080_v55 = vadd.f32 %v1079_v8, %v3016_v30  ;;  %v1210_v35 = vadd.f32 %v1209_v39, %v1179_v22  ;;  %v1102_v43 = vmul.f32 %v1761_v19, %v2842_v45  ;;  %v1182_v40 = vmul.f32 %v2965_v59, %v2965_v59 }
  0xd5   : > { %v1131_v29 = vadd.f32 %v1130_v24, %v1100_v15  ;;  %v943_v38 = vadd.f32 %v942_v14, %v912_v58  ;;  %v915_v33 = vmul.f32 %v2655_v31, %v3427_v2  ;;  %v1103_v13 = vmul.f32 %v1762_v52, %v2852_v61  ;;  %v3428_v58 = vld [vmem:[#allocation64_spill] sm:$0xff]  ;;  %v3046_v15 = vld [vmem:[%s2134_s10 + $0xe8] sm:$0xff] }
  0xd6   : > { %v1081_v7 = vadd.f32 %v1080_v55, %v3026_v3  ;;  %v1211_v37 = vadd.f32 %v1210_v35, %v1180_v5  ;;  %v1183_v16 = vmul.f32 %v2975_v25, %v2975_v25  ;;  %v916_v10 = vmul.f32 %v2667_v17, %v3428_v58  ;;  %v1763_v31 = vld [vmem:[%s2136_s12 + $0x60] sm:$0xff]  ;;  %v1765_v35 = vld [vmem:[%s2136_s12 + $0x70] sm:$0xff] }
  0xd7   : > { %v1132_v45 = vadd.f32 %v1131_v29, %v1101_v57  ;;  %v944_v48 = vadd.f32 %v943_v38, %v913_v28  ;;  %v1104_v49 = vmul.f32 %v1763_v31, %v2863_v32  ;;  %v1184_v5 = vmul.f32 %v2985_v54, %v2985_v54  ;;  %v3054_v28 = vld [vmem:[%s2134_s10 + $0xf0] sm:$0xff]  ;;  %v1767_v52 = vld [vmem:[%s2136_s12 + $0x80] sm:$0xff] }
  0xd8   : > { %v1082_v22 = vadd.f32 %v1081_v7, %v3036_v36  ;;  %v1212_v60 = vadd.f32 %v1211_v37, %v1181_v63  ;;  %v1105_v17 = vmul.f32 %v1764_v18, %v2874_v56  ;;  %v1185_v32 = vmul.f32 %v2996_v44, %v2996_v44  ;;  %v3062_v63 = vld [vmem:[%s2134_s10 + $0xf8] sm:$0xff] }
  0xd9   : > { %v1133_v61 = vadd.f32 %v1132_v45, %v1102_v43  ;;  %v945_v50 = vadd.f32 %v944_v48, %v914_v47  ;;  %v1106_v47 = vmul.f32 %v1765_v35, %v2885_v6  ;;  %v1186_v56 = vmul.f32 %v3006_v27, %v3006_v27  ;;  %v1766_v7 = vld [vmem:[%s2136_s12 + $0x78] sm:$0xff] }
  0xda   : > { %v1083_v8 = vadd.f32 %v1082_v22, %v3046_v15  ;;  %v1213_v39 = vadd.f32 %v1212_v60, %v1182_v40  ;;  %v1107_v40 = vmul.f32 %v1766_v7, %v2897_v9  ;;  %v1188_v48 = vmul.f32 %v3026_v3, %v3026_v3 }
  0xdb   : > { %v1134_v57 = vadd.f32 %v1133_v61, %v1103_v13  ;;  %v946_v24 = vadd.f32 %v945_v50, %v915_v33  ;;  %v1187_v33 = vmul.f32 %v3016_v30, %v3016_v30  ;;  %v1108_v13 = vmul.f32 %v1767_v52, %v2909_v42 }
  0xdc   : > { %v1084_v14 = vadd.f32 %v1083_v8, %v3054_v28  ;;  %v1214_v55 = vadd.f32 %v1213_v39, %v1183_v16  ;;  %v1768_v16 = vld [vmem:[%s2136_s12 + $0x88] sm:$0xff]  ;;  %v1190_v42 = vmul.f32 %v3046_v15, %v3046_v15 }
  0xdd   : > { %v1135_v19 = vadd.f32 %v1134_v57, %v1104_v49  ;;  %v947_v43 = vadd.f32 %v946_v24, %v916_v10  ;;  %v1109_v60 = vmul.f32 %v1768_v16, %v2923_v53  ;;  %v1189_v10 = vmul.f32 %v3036_v36, %v3036_v36  ;;  %v1769_v49 = vld [vmem:[%s2136_s12 + $0x90] sm:$0xff] }
  0xde   : > { %v1085_v29 = vadd.f32 %v1084_v14, %v3062_v63  ;;  %v1215_v38 = vadd.f32 %v1214_v55, %v1184_v5  ;;  %v1110_v61 = vmul.f32 %v1769_v49, %v2931_v0  ;;  %v1111_v5 = vmul.f32 %v2945_v11, %v3418_v4 }
  0xdf   : > { %v1136_v37 = vadd.f32 %v1135_v19, %v1105_v17  ;;  %948 = vadd.xlane.f32.xlu0 %v947_v43  ;;  %v1191_v53 = vmul.f32 %v3054_v28, %v3054_v28  ;;  %v1112_v17 = vmul.f32 %v2955_v23, %v3419_v41  ;;  %v1192_v0 = vmul.f32 %v3062_v63, %v3062_v63 }
  0xe0   : > { %1086 = vadd.xlane.f32.xlu2 %v1085_v29  ;;  %v1216_v6 = vadd.f32 %v1215_v38, %v1185_v32  ;;  %v1113_v14 = vmul.f32 %v2965_v59, %v3420_v20  ;;  %v1114_v4 = vmul.f32 %v2975_v25, %v2490_v21  ;;  %v1116_v41 = vmul.f32 %v2996_v44, %v3421_v26 }
  0xe1   : > { %v1137_v45 = vadd.f32 %v1136_v37, %v1106_v47  ;;  %v1115_v47 = vmul.f32 %v2985_v54, %v2508_v1  ;;  %v1117_v43 = vmul.f32 %v3006_v27, %v3422_v46  ;;  %v1118_v59 = vmul.f32 %v3016_v30, %v3423_v51 }
  0xe2   : > { %v1217_v22 = vadd.f32 %v1216_v6, %v1186_v56  ;;  %v1119_v21 = vmul.f32 %v3026_v3, %v3424_v34  ;;  %v640_v56 = vld [vmem:[#allocation2 + $0x10] sm:$0xff]  ;;  %v1120_v1 = vmul.f32 %v3036_v36, %v3425_v12  ;;  %v1121_v46 = vmul.f32 %v3046_v15, %v3426_v62  ;;  %v501_v12 = vld [vmem:[#allocation2] sm:$0xff]  ;;  %v677_v62 = vld [vmem:[#allocation2 + $0x18] sm:$0xff] }
  0xe3   : > { %v1138_v9 = vadd.f32 %v1137_v45, %v1107_v40  ;;  %v1122_v51 = vmul.f32 %v3054_v28, %v3427_v2  ;;  %v1123_v34 = vmul.f32 %v3062_v63, %v3428_v58  ;;  %v847_v15 = vld [vmem:[#allocation2 + $0x28] sm:$0xff]  ;;  %v746_v63 = vld [vmem:[#allocation2 + $0x20] sm:$0xff] }
  0xe4   : > { %v1218_v31 = vadd.f32 %v1217_v22, %v1187_v33  ;;  %v539_v2 = vld [vmem:[#allocation2 + $0x8] sm:$0xff] }
  0xe5   : > { %v1139_v50 = vadd.f32 %v1138_v9, %v1108_v13  ;;  %v1054_v9 = vld [vmem:[#allocation2 + $0x40] sm:$0xff] }
  0xe6   : > { %v1219_v8 = vadd.f32 %v1218_v31, %v1188_v48  ;;  %v953_v48 = vld [vmem:[#allocation2 + $0x38] sm:$0xff] }
  0xe7   : > { %v1140_v39 = vadd.f32 %v1139_v50, %v1109_v60  ;;  %v884_v60 = vld [vmem:[#allocation2 + $0x30] sm:$0xff] }
  0xe8   : > { %v1220_v18 = vadd.f32 %v1219_v8, %v1189_v10  ;;  %v1160_v50 = vld [vmem:[#allocation2 + $0x50] sm:$0xff] }
  0xe9   : > { %v1141_v57 = vadd.f32 %v1140_v39, %v1110_v61 }
  0xea   : > { %v1221_v24 = vadd.f32 %v1220_v18, %v1190_v42 }
  0xeb   : > { %v1142_v32 = vadd.f32 %v1141_v57, %v1111_v5  ;;  %v1091_v5 = vld [vmem:[#allocation2 + $0x48] sm:$0xff] }
  0xec   : > { %v1222_v55 = vadd.f32 %v1221_v24, %v1191_v53 }
  0xed   : > { %v1143_v11 = vadd.f32 %v1142_v32, %v1112_v17 }
  0xee   : > { %v1223_v35 = vadd.f32 %v1222_v55, %v1192_v0 }
  0xef   : > { %v1144_v19 = vadd.f32 %v1143_v11, %v1113_v14 }
  0xf0   : > { %1224 = vadd.xlane.f32.xlu1 %v1223_v35 }
  0xf1   : > { %v1145_v23 = vadd.f32 %v1144_v19, %v1114_v4 }
  0xf3   : > { %v1146_v20 = vadd.f32 %v1145_v23, %v1115_v47 }
  0xf5   : > { %v1147_v29 = vadd.f32 %v1146_v20, %v1116_v41 }
  0xf7   : > { %v1148_v25 = vadd.f32 %v1147_v29, %v1117_v43 }
  0xf9   : > { %v1149_v54 = vadd.f32 %v1148_v25, %v1118_v59 }
  0xfb   : > { %v1150_v44 = vadd.f32 %v1149_v54, %v1119_v21 }
  0xfc   : > { %v673_v38 = vpop.xlane.xlu1 %672 }
  0xfd   : > { %v674_v26 = vadd.f32 %v673_v38, %v640_v56  ;;  %v1151_v27 = vadd.f32 %v1150_v44, %v1120_v1 }
  0xff   : > { %675 = vst.msk [vmem:[#allocation2 + $0x10] sm:$0xff] %vm536_vm1, %v674_v26  ;;  %v1152_v30 = vadd.f32 %v1151_v27, %v1121_v46 }
 0x101   : > { %v1153_v3 = vadd.f32 %v1152_v30, %v1122_v51 }
 0x103   : > { %v1154_v36 = vadd.f32 %v1153_v3, %v1123_v34 }
 0x104   : > { %v534_v7 = vpop.xlane.xlu0 %533 }
 0x105   : > { %1155 = vadd.xlane.f32.xlu0 %v1154_v36  ;;  %v535_v40 = vadd.f32 %v534_v7, %v501_v12 }
 0x107   : > { %537 = vst.msk [vmem:[#allocation2] sm:$0xff] %vm536_vm1, %v535_v40 }
 0x109   : > { %v742_v37 = vpop.xlane.xlu1 %741 }
 0x10a   : > { %v743_v33 = vadd.f32 %v742_v37, %v677_v62 }
 0x10c   : > { %v880_v6 = vpop.xlane.xlu2 %879  ;;  %744 = vst.msk [vmem:[#allocation2 + $0x18] sm:$0xff] %vm536_vm1, %v743_v33 }
 0x10d   : > { %v881_v52 = vadd.f32 %v880_v6, %v847_v15 }
 0x10f   : > { %882 = vst.msk [vmem:[#allocation2 + $0x28] sm:$0xff] %vm536_vm1, %v881_v52 }
 0x119   : > { %v604_v58 = vpop.xlane.xlu0 %603 }
 0x11a   : > { %v605_v28 = vadd.f32 %v604_v58, %v539_v2 }
 0x11c   : > { %606 = vst.msk [vmem:[#allocation2 + $0x8] sm:$0xff] %vm536_vm1, %v605_v28 }
 0x131   : > { %v811_v13 = vpop.xlane.xlu2 %810 }
 0x132   : > { %v812_v45 = vadd.f32 %v811_v13, %v746_v63 }
 0x134   : > { %813 = vst.msk [vmem:[#allocation2 + $0x20] sm:$0xff] %vm536_vm1, %v812_v45 }
 0x146   : > { %v1018_v22 = vpop.xlane.xlu1 %1017 }
 0x147   : > { %v1019_v16 = vadd.f32 %v1018_v22, %v953_v48 }
 0x149   : > { %1020 = vst.msk [vmem:[#allocation2 + $0x38] sm:$0xff] %vm536_vm1, %v1019_v16 }
 0x152   : > { %v949_v10 = vpop.xlane.xlu0 %948 }
 0x153   : > { %v1087_v31 = vpop.xlane.xlu2 %1086  ;;  %v950_v49 = vadd.f32 %v949_v10, %v884_v60 }
 0x154   : > { %v1088_v61 = vadd.f32 %v1087_v31, %v1054_v9 }
 0x155   : > { %951 = vst.msk [vmem:[#allocation2 + $0x30] sm:$0xff] %vm536_vm1, %v950_v49 }
 0x156   : > { %1089 = vst.msk [vmem:[#allocation2 + $0x40] sm:$0xff] %vm536_vm1, %v1088_v61 }
 0x163   : > { %v1225_v42 = vpop.xlane.xlu1 %1224 }
 0x164   : > { %v1226_v8 = vadd.f32 %v1225_v42, %v1160_v50 }
 0x166   : > { %1227 = vst.msk [vmem:[#allocation2 + $0x50] sm:$0xff] %vm536_vm1, %v1226_v8 }
 0x177   : > { %1231 = sbr.rel (%p1671_p0) target bundleno = 644 (0x284), region = 68 }
 0x178   : > { %v1156_v39 = vpop.xlane.xlu0 %1155 }
 0x179   : > { %v1157_v53 = vadd.f32 %v1156_v39, %v1091_v5 }
 0x17b   : > { %1158 = vst.msk [vmem:[#allocation2 + $0x48] sm:$0xff] %vm536_vm1, %v1157_v53 }
 0x17c   : > { %v1441_v18 = vld [vmem:[%s3239_s4] sm:$0xff]  ;;  %vm1443_vm2 = vcmask 130048   ;;  %v1982_v57 = vmov 0   ;;  %v1456_v11 = vlaneseq  ;;  %v1233_v43 = vld [vmem:[#allocation2 + $0x8] sm:$0xff]  ;;  %v1237_v1 = vld [vmem:[#allocation2 + $0x10] sm:$0xff] }
 0x17d   : > { %v1444_v17 = vsel %vm1443_vm2, %v1441_v18, -inf  ;;  %1770 = vset.pattern.permute.xlu0 %v1982_v57  ;;  %v1442_v0 = vld [vmem:[%s3240_s5] sm:$0xff]  ;;  %v1314_v54 = vld [vmem:[#allocation2 + $0x28] sm:$0xff]  ;;  %v1238_v30 = vld [vmem:[#allocation2 + $0x18] sm:$0xff]  ;;  %v1243_v62 = vmul.f32 %v1237_v1, %v1237_v1 }
 0x17e   : > { %1445 = vmax.xlane.f32.xlu0 %v1444_v17  ;;  %v1232_v35 = vld [vmem:[#allocation2] sm:$0xff]  ;;  %v1457_v47 = vand.u32 127, %v1456_v11  ;;  %v1315_v36 = vld [vmem:[#allocation2 + $0x30] sm:$0xff]  ;;  %v1320_v33 = vmul.f32 %v1314_v54, %v1314_v54  ;;  %v1316_v48 = vld [vmem:[#allocation2 + $0x38] sm:$0xff] }
 0x17f   : > { %v1234_v19 = vmul.f32 %v1232_v35, %v1232_v35  ;;  %v1240_v38 = vmul.f32 %v1237_v1, %v1232_v35  ;;  %v1317_v46 = vmul.f32 %v1314_v54, %v1232_v35  ;;  %v1377_v51 = vld [vmem:[#allocation2 + $0x40] sm:$0xff]  ;;  %v1244_v2 = vmul.f32 6.25e-05, %v1243_v62  ;;  %v1379_v61 = vld [vmem:[#allocation2 + $0x50] sm:$0xff] }
 0x180   : > { %v1380_v7 = vmul.f32 %v1377_v51, %v1232_v35  ;;  %v1383_v63 = vmul.f32 %v1377_v51, %v1377_v51  ;;  %v1239_v13 = vld [vmem:[#allocation2 + $0x20] sm:$0xff]  ;;  %v1321_v22 = vmul.f32 6.25e-05, %v1320_v33 }
 0x181   : > { %v1235_v41 = vmul.f32 6.25e-05, %v1234_v19  ;;  %v1241_v27 = vmul.f32 6.25e-05, %v1240_v38  ;;  %v1318_v37 = vmul.f32 6.25e-05, %v1317_v46  ;;  %v1245_v60 = vsub.f32 %v1239_v13, %v1244_v2 }
 0x182   : > { %v1378_v6 = vld [vmem:[#allocation2 + $0x48] sm:$0xff]  ;;  %v1381_v52 = vmul.f32 6.25e-05, %v1380_v7  ;;  %v1384_v10 = vmul.f32 6.25e-05, %v1383_v63  ;;  %v1322_v49 = vsub.f32 %v1316_v48, %v1321_v22 }
 0x183   : > { %v3138_v20 = vsub.f32 %v1233_v43, %v1235_v41  ;;  %v1242_v40 = vsub.f32 %v1238_v30, %v1241_v27  ;;  %v1319_v28 = vsub.f32 %v1315_v36, %v1318_v37 }
 0x184   : > { %v1382_v16 = vsub.f32 %v1378_v6, %v1381_v52  ;;  %v1385_v8 = vsub.f32 %v1379_v61, %v1384_v10 }
 0x185   : > { %v1257_v44 = vand.u32 2147483648, %v3138_v20  ;;  %vm1251_vm4 = vweird.f32 %v3138_v20  ;;  %v1255_v3 = vand.u32 2147483647, %v3138_v20 }
 0x187   : > { %v1258_v12 = vor.u32 1.1754944e-38, %v1257_v44  ;;  %vm1256_vm7 = vcmp.eq.f32.partialorder %v1255_v3, 8.507059e+37 }
 0x192   : > { %1459 = vperm.xlu0 %1770, %v1442_v0  }
 0x1f1   : > { %v3134_v24 = vpop.xlane.xlu0 %1445 }
 0x1f2   : > { %v1447_v14 = vsub.f32 %v1441_v18, %v3134_v24 }
 0x1f4   : > { %v1448_v32 = vmul.f32 1.442695, %v1447_v14 }
 0x1f6   : > { %1771 = vpow2.f32 %v1448_v32 }
 0x1f7   : > { %1773 = vrcp.f32 %v3138_v20 }
 0x1fc   : > { %v1772_v55 = vpop.eup %1771 }
 0x1fd   : > { %v1450_v4 = vsel %vm1443_vm2, %v1772_v55, 0.0  ;;  %v1774_v21 = vpop.eup %1773 }
 0x1fe   : > { %1451 = vadd.xlane.f32.xlu1 %v1450_v4  ;;  %v1247_v25 = vmul.f32 %v1774_v21, %v3138_v20  ;;  %vm1252_vm5 = vweird.f32 %v1774_v21 }
 0x1ff   : > { %vm1253_vm6 = vmor %vm1251_vm4, %vm1252_vm5 }
 0x200   : > { %v1248_v56 = vsub.f32 1.0, %v1247_v25 }
 0x202   : > { %v1249_v26 = vmul.f32 %v1774_v21, %v1248_v56 }
 0x204   : > { %v1460_v23 = vpop.permute.xlu0 %1459  ;;  %v1250_v34 = vadd.f32 %v1774_v21, %v1249_v26 }
 0x205   : > { %vm1461_vm3 = vcmp.eq.s32.totalorder %v1457_v47, %v1460_v23 }
 0x206   : > { %v1462_v59 = vsel %vm1461_vm3, %v1441_v18, 0.0  ;;  %v1254_v15 = vsel %vm1253_vm6, %v1774_v21, %v1250_v34 }
 0x207   : > { %v1463_v29 = vsel %vm1443_vm2, %v1462_v59, 0.0  ;;  %v1259_v58 = vsel %vm1256_vm7, %v1258_v12, %v1254_v15 }
 0x208   : > { %1464 = vadd.xlane.f32.xlu1 %v1463_v29  ;;  %v1260_v45 = vmul.f32 %v1259_v58, %v1242_v40  ;;  %v1323_v9 = vmul.f32 %v1319_v28, %v1259_v58  ;;  %v1386_v50 = vmul.f32 %v1382_v16, %v1259_v58 }
 0x20a   : > { %v1276_v31 = vmul.f32 %v1260_v45, %v1242_v40  ;;  %v1339_v42 = vmul.f32 %v1323_v9, %v1319_v28  ;;  %v1402_v39 = vmul.f32 %v1386_v50, %v1382_v16  ;;  %v1261_v43 = vmul.f32 %v1260_v45, %v1260_v45 }
 0x20b   : > { %v1324_v59 = vmul.f32 %v1323_v9, %v1323_v9  ;;  %v1387_v38 = vmul.f32 %v1386_v50, %v1386_v50 }
 0x20c   : > { %v1277_v5 = vsub.f32 %v1245_v60, %v1276_v31  ;;  %v1340_v53 = vsub.f32 %v1322_v49, %v1339_v42  ;;  %v1403_v17 = vsub.f32 %v1385_v8, %v1402_v39  ;;  %v1262_v56 = vmul.f32 %v1261_v43, %v3138_v20 }
 0x20d   : > { %v1325_v1 = vmul.f32 %v1324_v59, %v3138_v20  ;;  %v1388_v34 = vmul.f32 %v1387_v38, %v3138_v20 }
 0x20e   : > { %v1278_v18 = vmax.f32 %v1277_v5, 0.0  ;;  %v1341_v57 = vmax.f32 %v1340_v53, 0.0  ;;  %v1404_v0 = vmax.f32 %v1403_v17, 0.0  ;;  %v3148_v44 = vmax.f32 %v1262_v56, 0.0 }
 0x20f   : > { %v3150_v51 = vmax.f32 %v1325_v1, 0.0  ;;  %v3155_v40 = vmax.f32 %v1388_v34, 0.0 }
 0x210   : > { %1775 = vrsqrt.f32 %v1278_v18  ;;  %vm1286_vm8 = vcmp.eq.f32.partialorder %v1278_v18, inf  ;;  %v1289_v3 = vand.u32 2147483648, %v1278_v18  ;;  %vm1349_vm9 = vcmp.eq.f32.partialorder %v1341_v57, inf }
 0x211   : > { %1777 = vrsqrt.f32 %v1341_v57  ;;  %vm1288_vm10 = vcmp.eq.f32.partialorder %v1278_v18, 0.0  ;;  %vm1351_vm11 = vcmp.eq.f32.partialorder %v1341_v57, 0.0  ;;  %v1352_v7 = vand.u32 2147483648, %v1341_v57 }
 0x212   : > { %1779 = vrsqrt.f32 %v1404_v0  ;;  %vm1412_vm12 = vcmp.eq.f32.partialorder %v1404_v0, inf  ;;  %v1415_v2 = vand.u32 2147483648, %v1404_v0  ;;  %vm1414_vm13 = vcmp.eq.f32.partialorder %v1404_v0, 0.0 }
 0x213   : > { %1781 = vrsqrt.f32 %v3148_v44  ;;  %vm1271_vm0 = vcmp.eq.f32.partialorder %v3148_v44, inf  ;;  %vm1334_vm3 = vcmp.eq.f32.partialorder %v3150_v51, inf  ;;  %vm1273_vm7 = vcmp.eq.f32.partialorder %v3148_v44, 0.0 }
 0x214   : > { %1783 = vrsqrt.f32 %v3150_v51 }
 0x215   : > { %1785 = vrsqrt.f32 %v3155_v40 }
 0x216   : > { %v1776_v14 = vpop.eup %1775 }
 0x217   : > { %v1778_v32 = vpop.eup %1777  ;;  %v1280_v55 = vmul.f32 %v1776_v14, %v1278_v18 }
 0x218   : > { %v1780_v4 = vpop.eup %1779  ;;  %v1343_v11 = vmul.f32 %v1778_v32, %v1341_v57 }
 0x219   : > { %v1281_v35 = vmul.f32 %v1776_v14, %v1280_v55  ;;  %v1406_v47 = vmul.f32 %v1780_v4, %v1404_v0  ;;  %v1782_v58 = vpop.eup %1781 }
 0x21a   : > { %v1344_v19 = vmul.f32 %v1778_v32, %v1343_v11  ;;  %v1784_v63 = vpop.eup %1783  ;;  %v1265_v13 = vmul.f32 %v1782_v58, %v3148_v44 }
 0x21b   : > { %v1282_v41 = vmul.f32 0.5, %v1281_v35  ;;  %v1407_v23 = vmul.f32 %v1780_v4, %v1406_v47  ;;  %v1328_v45 = vmul.f32 %v1784_v63, %v3150_v51  ;;  %v1786_v48 = vpop.eup %1785  ;;  %v1274_v47 = vand.u32 2147483648, %v3148_v44 }
 0x21c   : > { %v1345_v29 = vmul.f32 0.5, %v1344_v19  ;;  %v1266_v22 = vmul.f32 %v1782_v58, %v1265_v13  ;;  %v1391_v31 = vmul.f32 %v1786_v48, %v3155_v40 }
 0x21d   : > { %v1283_v21 = vsub.f32 1.5, %v1282_v41  ;;  %v1408_v25 = vmul.f32 0.5, %v1407_v23  ;;  %v1329_v60 = vmul.f32 %v1784_v63, %v1328_v45 }
 0x21e   : > { %v1346_v54 = vsub.f32 1.5, %v1345_v29  ;;  %v1267_v10 = vmul.f32 0.5, %v1266_v22  ;;  %v1392_v17 = vmul.f32 %v1786_v48, %v1391_v31 }
 0x21f   : > { %v1284_v26 = vmul.f32 %v1776_v14, %v1283_v21  ;;  %v1409_v46 = vsub.f32 1.5, %v1408_v25  ;;  %v1330_v50 = vmul.f32 0.5, %v1329_v60 }
 0x220   : > { %v1347_v27 = vmul.f32 %v1778_v32, %v1346_v54  ;;  %v1268_v8 = vsub.f32 1.5, %v1267_v10 }
 0x221   : > { %v1285_v30 = vmul.f32 %v1284_v26, %v1278_v18  ;;  %v1410_v37 = vmul.f32 %v1780_v4, %v1409_v46  ;;  %v1331_v53 = vsub.f32 1.5, %v1330_v50  ;;  %v1393_v4 = vmul.f32 0.5, %v1392_v17 }
 0x222   : > { %v1348_v12 = vmul.f32 %v1347_v27, %v1341_v57  ;;  %v1337_v27 = vand.u32 2147483648, %v3150_v51 }
 0x223   : > { %v1287_v36 = vsel %vm1286_vm8, %v1278_v18, %v1285_v30  ;;  %v1411_v52 = vmul.f32 %v1410_v37, %v1404_v0  ;;  %v1269_v18 = vmul.f32 %v1782_v58, %v1268_v8  ;;  %v1394_v54 = vsub.f32 1.5, %v1393_v4 }
 0x224   : > { %v1290_v62 = vsel %vm1288_vm10, %v1289_v3, %v1287_v36  ;;  %v1350_v15 = vsel %vm1349_vm9, %v1341_v57, %v1348_v12  ;;  %vm1336_vm9 = vcmp.eq.f32.partialorder %v3150_v51, 0.0 }
 0x225   : > { %v1291_v33 = vadd.f32 1e-06, %v1290_v62  ;;  %v1353_v20 = vsel %vm1351_vm11, %v1352_v7, %v1350_v15  ;;  %v1413_v28 = vsel %vm1412_vm12, %v1404_v0, %v1411_v52  ;;  %v1332_v0 = vmul.f32 %v1784_v63, %v1331_v53 }
 0x226   : > { %v3158_v6 = vadd.f32 1e-06, %v1353_v20  ;;  %v1416_v16 = vsel %vm1414_vm13, %v1415_v2, %v1413_v28  ;;  %v1270_v32 = vmul.f32 %v1269_v18, %v3148_v44  ;;  %v1395_v34 = vmul.f32 %v1786_v48, %v1394_v54 }
 0x227   : > { %1787 = vrcp.f32 %v1291_v33  ;;  %v3164_v42 = vadd.f32 1e-06, %v1416_v16  ;;  %vm1297_vm14 = vweird.f32 %v1291_v33  ;;  %v1303_v55 = vand.u32 2147483648, %v1291_v33 }
 0x228   : > { %1789 = vrcp.f32 %v3158_v6  ;;  %v1301_v35 = vand.u32 2147483647, %v1291_v33  ;;  %v1333_v41 = vmul.f32 %v1332_v0, %v3150_v51  ;;  %v1366_v43 = vand.u32 2147483648, %v3158_v6 }
 0x229   : > { %1791 = vrcp.f32 %v3164_v42  ;;  %vm1360_vm4 = vweird.f32 %v3158_v6  ;;  %v1364_v29 = vand.u32 2147483647, %v3158_v6  ;;  %v1272_v21 = vsel %vm1271_vm0, %v3148_v44, %v1270_v32 }
 0x22a   : > { %v1304_v25 = vor.u32 1.1754944e-38, %v1303_v55  ;;  %vm3188_vm8 = vcmp.eq.f32.partialorder %v1301_v35, 8.507059e+37  ;;  %v1335_v46 = vsel %vm1334_vm3, %v3150_v51, %v1333_v41  ;;  %v1367_v12 = vor.u32 1.1754944e-38, %v1366_v43 }
 0x22b   : > { %vm1365_vm10 = vcmp.eq.f32.partialorder %v1364_v29, 8.507059e+37  ;;  %vm1423_vm11 = vweird.f32 %v3164_v42  ;;  %v1396_v36 = vmul.f32 %v1395_v34, %v3155_v40  ;;  %v1427_v62 = vand.u32 2147483647, %v3164_v42 }
 0x22c   : > { %vm1397_vm13 = vcmp.eq.f32.partialorder %v3155_v40, inf  ;;  %v1429_v15 = vand.u32 2147483648, %v3164_v42  ;;  %v1275_v37 = vsel %vm1273_vm7, %v1274_v47, %v1272_v21  ;;  %v1400_v2 = vand.u32 2147483648, %v3155_v40 }
 0x22d   : > { %v1788_v9 = vpop.eup %1787  ;;  %v1398_v28 = vsel %vm1397_vm13, %v3155_v40, %v1396_v36  ;;  %vm1428_vm0 = vcmp.eq.f32.partialorder %v1427_v62, 8.507059e+37 }
 0x22e   : > { %v1790_v49 = vpop.eup %1789  ;;  %v1293_v61 = vmul.f32 %v1788_v9, %v1291_v33  ;;  %vm1298_vm15 = vweird.f32 %v1788_v9  ;;  %v1430_v58 = vor.u32 1.1754944e-38, %v1429_v15 }
 0x22f   : > { %v1356_v5 = vmul.f32 %v1790_v49, %v3158_v6  ;;  %vm3171_vm2 = vmor %vm1297_vm14, %vm1298_vm15  ;;  %v1792_v59 = vpop.eup %1791  ;;  %vm1361_vm5 = vweird.f32 %v1790_v49  ;;  %v1338_v6 = vsel %vm1336_vm9, %v1337_v27, %v1335_v46  ;;  %vm1399_vm15 = vcmp.eq.f32.partialorder %v3155_v40, 0.0 }
 0x230   : > { %v1294_v39 = vsub.f32 1.0, %v1293_v61  ;;  %vm3181_vm6 = vmor %vm1360_vm4, %vm1361_vm5  ;;  %v1419_v30 = vmul.f32 %v1792_v59, %v3164_v42  ;;  %vm1424_vm12 = vweird.f32 %v1792_v59  ;;  %v1401_v48 = vsel %vm1399_vm15, %v1400_v2, %v1398_v28 }
 0x231   : > { %v1357_v14 = vsub.f32 1.0, %v1356_v5  ;;  %vm1425_vm14 = vmor %vm1423_vm11, %vm1424_vm12 }
 0x232   : > { %v1295_v57 = vmul.f32 %v1788_v9, %v1294_v39  ;;  %v1420_v7 = vsub.f32 1.0, %v1419_v30 }
 0x233   : > { %v1358_v23 = vmul.f32 %v1790_v49, %v1357_v14 }
 0x234   : > { %v1296_v11 = vadd.f32 %v1788_v9, %v1295_v57  ;;  %v1421_v20 = vmul.f32 %v1792_v59, %v1420_v7 }
 0x235   : > { %v1359_v56 = vadd.f32 %v1790_v49, %v1358_v23 }
 0x236   : > { %v1300_v38 = vsel %vm3171_vm2, %v1788_v9, %v1296_v11  ;;  %v1422_v63 = vadd.f32 %v1792_v59, %v1421_v20 }
 0x237   : > { %v1363_v3 = vsel %vm3181_vm6, %v1790_v49, %v1359_v56  ;;  %v1305_v33 = vsel %vm3188_vm8, %v1304_v25, %v1300_v38 }
 0x238   : > { %v1368_v52 = vsel %vm1365_vm10, %v1367_v12, %v1363_v3  ;;  %v1306_v44 = vmul.f32 %v1305_v33, %v1275_v37  ;;  %v1426_v45 = vsel %vm1425_vm14, %v1792_v59, %v1422_v63 }
 0x239   : > { %v1369_v13 = vmul.f32 %v1368_v52, %v1338_v6  ;;  %v1431_v22 = vsel %vm1428_vm0, %v1430_v58, %v1426_v45 }
 0x23a   : > { %v1307_v16 = vadd.f32 1e-06, %v1306_v44  ;;  %v1432_v51 = vmul.f32 %v1431_v22, %v1401_v48 }
 0x23b   : > { %v1370_v60 = vadd.f32 1e-06, %v1369_v13 }
 0x23c   : > { %1793 = vlog2.f32 %v1307_v16  ;;  %v1433_v9 = vadd.f32 1e-06, %v1432_v51 }
 0x23d   : > { %1795 = vlog2.f32 %v1370_v60 }
 0x23e   : > { %1797 = vlog2.f32 %v1433_v9 }
 0x242   : > { %v1794_v10 = vpop.eup %1793 }
 0x243   : > { %v1796_v31 = vpop.eup %1795  ;;  %v1309_v49 = vmul.f32 0.6931472, %v1794_v10 }
 0x244   : > { %v1372_v61 = vmul.f32 0.6931472, %v1796_v31  ;;  %v1798_v50 = vpop.eup %1797 }
 0x245   : > { %v1310_v40 = vmul.f32 0.4342945, %v1309_v49  ;;  %v1435_v8 = vmul.f32 0.6931472, %v1798_v50 }
 0x246   : > { %v1373_v42 = vmul.f32 0.4342945, %v1372_v61 }
 0x247   : > { %v1311_v5 = vmul.f32 20.0, %v1310_v40  ;;  %v1436_v53 = vmul.f32 0.4342945, %v1435_v8 }
 0x248   : > { %v1374_v39 = vmul.f32 20.0, %v1373_v42 }
 0x249   : > { %v1312_v17 = vmul.f32 0.8, %v1311_v5  ;;  %v1437_v0 = vmul.f32 20.0, %v1436_v53 }
 0x24a   : > { %v1375_v57 = vmul.f32 0.1, %v1374_v39 }
 0x24b   : > { %v1438_v32 = vmul.f32 0.1, %v1437_v0 }
 0x24c   : > { %v1376_v14 = vadd.f32 %v1375_v57, %v1312_v17 }
 0x24e   : > { %v1439_v11 = vadd.f32 %v1438_v32, %v1376_v14 }
 0x250   : > { %v1440_v19 = vsub.f32 0.0, %v1439_v11 }
 0x271   : > { %v1452_v18 = vpop.xlane.xlu1 %1451 }
 0x272   : > { %1799 = vlog2.f32 %v1452_v18 }
 0x278   : > { %v1800_v55 = vpop.eup %1799 }
 0x279   : > { %v1454_v4 = vmul.f32 0.6931472, %v1800_v55 }
 0x27b   : > { %v1455_v35 = vadd.f32 %v1454_v4, %v3134_v24  ;;  %v1465_v47 = vpop.xlane.xlu1 %1464 }
 0x27d   : > { %v1466_v41 = vsub.f32 %v1455_v35, %v1465_v47 }
 0x27f   : > { %v1467_v23 = vmul.f32 0.5, %v1466_v41 }
 0x281   : > { %v1468_v43 = vadd.f32 %v1467_v23, %v1440_v19 }
 0x283   : > { %1469 = vst.msk [vmem:[%s3241_s6] sm:$0xff] %vm536_vm1, %v1468_v43 }
 0x284 PF: > { %s25_s26 = sadd.s32 1, %s1979_s26   ;;  %s3435_s19 = sld [smem:[#allocation15_spill]] }
 0x285   : > { %p22_p1 = scmp.ge.s32.totalorder %s25_s26, 6   ;;  %s3436_s24 = sld [smem:[#allocation13_spill]] }
 0x286   : > { %s3437_s25 = sld [smem:[#allocation14_spill]]  ;;  %s3438_s21 = smov %s1963_s22 }
 0x287   : > { %s3439_s22 = smov %s1967_s23  ;;  %24 = sbr.rel (!%p22_p1) target bundleno = 11 (0xb), region = 145 }
 0x28a   : > { %s3440_s23 = smov %s3435_s19 }
 0x28c   :  { %1489 = vsyncpa [#allocation4], 1 }
 0x28d   :  { %1491 = vsyncpa [#allocation4 + $0x1], 1 }
 0x28e   :  { %1492 = vsyncpa [#allocation6], 1 }
 0x28f   :  { %1494 = vsyncpa [#allocation6 + $0x1], 1 }
 0x290   :  { %1495 = vsyncpa [#allocation9], 1 }
 0x291   :  { %1497 = vsyncpa [#allocation9 + $0x1], 1 }

</bundles_post_ra>
